<compile_context>
chip_gen: v5e
topology: v5e:2x2
jax: 0.10.0
libtpu: 0.0.40
codegen_flags: <defaults>
</compile_context>

<pallas_src>
import functools

import jax
import jax.numpy as jnp
from jax.experimental import pallas as pl
from jax.experimental.pallas import tpu as pltpu


def _conv_tile(x, w_ref, *, K, W):
    """x: (TM, W + K - 1, K*Cin) bf16 tile value; w_ref: (K, K*Cin, Cout_pad) ref.

    Returns the (TM*W, Cout_pad) f32 conv output for the tile as K accumulating MXU dots
    (one per column tap kw; the row taps kh were pre-stacked on the channel axis).
    """
    TM, _, KCin = x.shape
    acc = None
    for kw in range(K):                                   # static, unrolled
        slab = x[:, kw:kw + W, :].reshape(TM * W, KCin)
        part = jnp.dot(slab, w_ref[kw], preferred_element_type=jnp.float32)
        acc = part if acc is None else acc + part
    return acc


def _stats_kernel(x_ref, w_ref, sums_ref, *, K, W):
    # sums_ref: (2, Cout_pad) f32 resident accumulator; row 0 = sum, row 1 = sum of squares.
    @pl.when(pl.program_id(0) == 0)
    def _init():
        sums_ref[...] = jnp.zeros_like(sums_ref)

    conv = _conv_tile(x_ref[...], w_ref, K=K, W=W)            # (TM*W, Cout_pad) f32
    s = jnp.sum(conv, axis=0, keepdims=True)                  # (1, Cout_pad)
    sq = jnp.sum(conv * conv, axis=0, keepdims=True)          # (1, Cout_pad)
    sums_ref[...] += jnp.concatenate([s, sq], axis=0)


def _apply_kernel(x_ref, w_ref, scale_ref, shift_ref, out_ref, *, K, W):
    conv = _conv_tile(x_ref[...], w_ref, K=K, W=W)            # (TM*W, Cout_pad) f32
    y = conv * scale_ref[...] + shift_ref[...]                # folded BN: mul + add
    out_ref[...] = jnp.maximum(y, 0.0).astype(out_ref.dtype)  # ReLU, lane-dense store


def _pick_rows_per_tile(M, Wp, W, KCin, Cout_pad, budget_bytes=8 << 20):
    """Largest divisor of M whose double-buffered tiles fit the VMEM budget."""
    best = 1
    for tm in range(1, M + 1):
        if M % tm:
            continue
        if (tm * W) % 8 and tm != M:          # keep output block sublane-aligned
            continue
        need = (2 * tm * Wp * KCin * 2          # bf16 input tile, double buffered
                + 2 * tm * W * Cout_pad * 4     # f32 output tile, double buffered
                + tm * W * Cout_pad * 4)        # f32 conv accumulator value
        if need <= budget_bytes:
            best = tm
    return best


def conv_block(x_nchw, w_oihw, gamma, beta, *, eps=1e-5, rows_per_tile=None):
    """Conv(k, s=1, p=(k-1)//2, bias=False) -> BatchNorm2d(train) -> ReLU.  NCHW in/out."""
    N, Cin, H, W = x_nchw.shape
    Cout, Cin_w, K, K2 = w_oihw.shape
    assert Cin_w == Cin and K == K2 and K % 2 == 1, "stride-1 same-padding conv only"
    pad = (K - 1) // 2
    Wp = W + 2 * pad
    KCin = K * Cin
    LANE = 128
    Cout_pad = ((Cout + LANE - 1) // LANE) * LANE
    M = N * H

    # --- wrapper glue: NCHW -> NHWC, zero pad, stack K row-shifted views on channels ---
    x_nhwc = jnp.transpose(x_nchw, (0, 2, 3, 1))
    x_pad = jnp.pad(x_nhwc, ((0, 0), (pad, pad), (pad, pad), (0, 0))).astype(jnp.bfloat16)
    x_rows = jnp.concatenate([x_pad[:, kh:kh + H] for kh in range(K)], axis=-1)
    x_rows = x_rows.reshape(M, Wp, KCin)                       # (N*H, W+2p, K*Cin) bf16

    # weights: OIHW -> (Kw, Kh*Cin, Cout), matching the row-shift channel stacking; pad lanes
    w_taps = jnp.transpose(w_oihw, (3, 2, 1, 0)).reshape(K, KCin, Cout)
    w_taps = jnp.pad(w_taps, ((0, 0), (0, 0), (0, Cout_pad - Cout))).astype(jnp.bfloat16)

    if rows_per_tile is None:
        rows_per_tile = _pick_rows_per_tile(M, Wp, W, KCin, Cout_pad)
    TM = rows_per_tile
    assert M % TM == 0 and ((TM * W) % 8 == 0 or TM == M)
    num_tiles = M // TM

    in_tile_b = TM * Wp * KCin * 2
    out_tile_b = TM * W * Cout_pad * 4
    vmem_limit = int(min(max(6 * (in_tile_b + out_tile_b), 16 << 20), 40 << 20))

    x_spec = pl.BlockSpec((TM, Wp, KCin), lambda i: (i, 0, 0))
    w_spec = pl.BlockSpec((K, KCin, Cout_pad), lambda i: (0, 0, 0))

    # --- pass 1: per-channel sum / sum-of-squares of the conv output ---
    stats = pl.pallas_call(
        functools.partial(_stats_kernel, K=K, W=W),
        out_shape=jax.ShapeDtypeStruct((2, Cout_pad), jnp.float32),
        grid_spec=pl.GridSpec(
            grid=(num_tiles,),
            in_specs=[x_spec, w_spec],
            out_specs=pl.BlockSpec((2, Cout_pad), lambda i: (0, 0)),
        ),
        compiler_params=pltpu.CompilerParams(
            dimension_semantics=("arbitrary",),
            vmem_limit_bytes=vmem_limit),
    )(x_rows, w_taps)

    # --- tiny XLA epilogue: fold BatchNorm into per-channel scale/shift ---
    count = float(N * H * W)
    mean = stats[0] / count
    var = jnp.maximum(stats[1] / count - mean * mean, 0.0)     # guard cancellation
    gamma_p = jnp.pad(gamma.astype(jnp.float32), (0, Cout_pad - Cout))
    beta_p = jnp.pad(beta.astype(jnp.float32), (0, Cout_pad - Cout))
    scale = gamma_p * jax.lax.rsqrt(var + eps)
    shift = beta_p - mean * scale
    scale2d = scale.reshape(1, Cout_pad)
    shift2d = shift.reshape(1, Cout_pad)

    # --- pass 2: recompute conv per tile, apply scale/shift + ReLU, lane-dense store ---
    out2d = pl.pallas_call(
        functools.partial(_apply_kernel, K=K, W=W),
        out_shape=jax.ShapeDtypeStruct((M * W, Cout_pad), jnp.float32),
        grid_spec=pl.GridSpec(
            grid=(num_tiles,),
            in_specs=[x_spec, w_spec,
                      pl.BlockSpec((1, Cout_pad), lambda i: (0, 0)),
                      pl.BlockSpec((1, Cout_pad), lambda i: (0, 0))],
            out_specs=pl.BlockSpec((TM * W, Cout_pad), lambda i: (i, 0)),
        ),
        compiler_params=pltpu.CompilerParams(
            dimension_semantics=("parallel",),
            vmem_limit_bytes=vmem_limit),
    )(x_rows, w_taps, scale2d, shift2d)

    # glue back to NCHW (could be skipped / fused if the consumer accepts NHWC)
    out = out2d.reshape(N, H, W, Cout_pad)[..., :Cout]
    return jnp.transpose(out, (0, 3, 1, 2))


def _reference(x_nchw, w_oihw, gamma, beta, eps=1e-5):
    conv = jax.lax.conv_general_dilated(
        x_nchw, w_oihw, window_strides=(1, 1), padding=((1, 1), (1, 1)),
        dimension_numbers=("NCHW", "OIHW", "NCHW"))
    mean = jnp.mean(conv, axis=(0, 2, 3), keepdims=True)
    var = jnp.mean((conv - mean) ** 2, axis=(0, 2, 3), keepdims=True)
    y = (conv - mean) * jax.lax.rsqrt(var + eps) * gamma.reshape(1, -1, 1, 1) \
        + beta.reshape(1, -1, 1, 1)
    return jnp.maximum(y, 0.0)


if __name__ == "__main__":
    # Small shapes consistent with ConvBlock(in_ch=4, out_ch=8, k=3, s=1, p=1)
    N, Cin, H, W = 2, 4, 16, 16
    Cout, K = 8, 3

    key = jax.random.PRNGKey(0)
    kx, kw = jax.random.split(key)

    x = jax.random.normal(kx, (N, Cin, H, W), dtype=jnp.float32)

    # kaiming_normal_(mode='fan_out', nonlinearity='relu'): std = sqrt(2 / (Cout*K*K))
    fan_out = Cout * K * K
    w = jax.random.normal(kw, (Cout, Cin, K, K), dtype=jnp.float32) * jnp.sqrt(2.0 / fan_out)
    gamma = jnp.ones((Cout,), dtype=jnp.float32)   # bn.weight = 1
    beta = jnp.zeros((Cout,), dtype=jnp.float32)   # bn.bias = 0
    # TODO(synk): BatchNorm running_mean/running_var in-place updates (training-mode side
    # effect) are not modeled; they do not affect the forward output.

    fn = jax.jit(functools.partial(conv_block, rows_per_tile=8))   # 4 row tiles -> grid=(4,)
    out = jax.block_until_ready(fn(x, w, gamma, beta))
    assert out.shape == (N, Cout, H, W)

    # primary check: reference fed the same bf16-rounded activations/weights as the kernel
    xb = x.astype(jnp.bfloat16).astype(jnp.float32)
    wb = w.astype(jnp.bfloat16).astype(jnp.float32)
    ref_b = _reference(xb, wb, gamma, beta)
    assert jnp.allclose(out, ref_b, atol=2e-3, rtol=2e-3), \
        float(jnp.max(jnp.abs(out - ref_b)))

    # sanity check against full-f32 module semantics (difference = bf16 input rounding only)
    ref_f32 = _reference(x, w, gamma, beta)
    assert jnp.allclose(out, ref_f32, atol=5e-2, rtol=5e-2), \
        float(jnp.max(jnp.abs(out - ref_f32)))

    print("KERNEL_OK")
</pallas_src>

<mosaic_0001>
module attributes {stable_mosaic.version = 11 : i64} {
  func.func @_stats_kernel(%arg0: i32, %arg1: memref<8x18x12xbf16, #tpu.memory_space<vmem>>, %arg2: memref<3x12x128xbf16, #tpu.memory_space<vmem>>, %arg3: memref<2x128xf32, #tpu.memory_space<vmem>>) attributes {dimension_semantics = [#tpu.dimension_semantics<arbitrary>], iteration_bounds = array<i64: 4>, scalar_prefetch = 0 : i64, scratch_operands = 0 : i64, tpu.core_type = #tpu.core_type<tc>, window_params = [{transform_indices = @transform_0, window_bounds = array<i64: 8, 18, 12>}, {pipeline_mode = #tpu.pipeline_mode<synchronous>, transform_indices = @transform_1, window_bounds = array<i64: 3, 12, 128>}, {pipeline_mode = #tpu.pipeline_mode<synchronous>, transform_indices = @transform_2, window_bounds = array<i64: 2, 128>}]} {
    %c0_i32 = arith.constant 0 : i32
    %0 = arith.cmpi eq, %arg0, %c0_i32 : i32
    %1 = arith.extui %0 : i1 to i32
    %c0_i32_0 = arith.constant 0 : i32
    %2 = arith.cmpi ne, %1, %c0_i32_0 : i32
    scf.if %2 {
      %cst_18 = arith.constant 0.000000e+00 : f32
      %30 = vector.broadcast %cst_18 : f32 to vector<2x128xf32>
      %c0_19 = arith.constant 0 : index
      %c0_20 = arith.constant 0 : index
      %31 = vector.load %arg3[%c0_19, %c0_20] : memref<2x128xf32, #tpu.memory_space<vmem>>, vector<2x128xf32>
      tpu.vector_store %arg3[%c0_19, %c0_20], %30 {strides = array<i32>} : memref<2x128xf32, #tpu.memory_space<vmem>>, vector<2x128xf32>,
    } else {
    }
    %c0 = arith.constant 0 : index
    %c0_1 = arith.constant 0 : index
    %c0_2 = arith.constant 0 : index
    %3 = vector.load %arg1[%c0, %c0_1, %c0_2] : memref<8x18x12xbf16, #tpu.memory_space<vmem>>, vector<8x18x12xbf16>
    %4 = vector.extract_strided_slice %3 {offsets = [0, 0, 0], sizes = [8, 16, 12], strides = [1, 1, 1]} : vector<8x18x12xbf16> to vector<8x16x12xbf16>
    %5 = vector.shape_cast %4 : vector<8x16x12xbf16> to vector<128x12xbf16>
    %c0_3 = arith.constant 0 : index
    %c0_4 = arith.constant 0 : index
    %c0_5 = arith.constant 0 : index
    %6 = vector.load %arg2[%c0_3, %c0_4, %c0_5] : memref<3x12x128xbf16, #tpu.memory_space<vmem>>, vector<1x12x128xbf16>
    %7 = vector.shape_cast %6 : vector<1x12x128xbf16> to vector<12x128xbf16>
    %cst = arith.constant dense<0.000000e+00> : vector<128x128xf32>
    %8 = tpu.matmul %5, %7, %cst {dimension_numbers = #tpu.dot_dimension_numbers<[1], [0], [0], [1], [0, 0, 1, 1], [], []>} : vector<128x12xbf16>, vector<12x128xbf16>, vector<128x128xf32> -> vector<128x128xf32>
    %9 = vector.extract_strided_slice %3 {offsets = [0, 1, 0], sizes = [8, 16, 12], strides = [1, 1, 1]} : vector<8x18x12xbf16> to vector<8x16x12xbf16>
    %10 = vector.shape_cast %9 : vector<8x16x12xbf16> to vector<128x12xbf16>
    %c1 = arith.constant 1 : index
    %c0_6 = arith.constant 0 : index
    %c0_7 = arith.constant 0 : index
    %11 = vector.load %arg2[%c1, %c0_6, %c0_7] : memref<3x12x128xbf16, #tpu.memory_space<vmem>>, vector<1x12x128xbf16>
    %12 = vector.shape_cast %11 : vector<1x12x128xbf16> to vector<12x128xbf16>
    %cst_8 = arith.constant dense<0.000000e+00> : vector<128x128xf32>
    %13 = tpu.matmul %10, %12, %cst_8 {dimension_numbers = #tpu.dot_dimension_numbers<[1], [0], [0], [1], [0, 0, 1, 1], [], []>} : vector<128x12xbf16>, vector<12x128xbf16>, vector<128x128xf32> -> vector<128x128xf32>
    %14 = arith.addf %8, %13 : vector<128x128xf32>
    %15 = vector.extract_strided_slice %3 {offsets = [0, 2, 0], sizes = [8, 16, 12], strides = [1, 1, 1]} : vector<8x18x12xbf16> to vector<8x16x12xbf16>
    %16 = vector.shape_cast %15 : vector<8x16x12xbf16> to vector<128x12xbf16>
    %c2 = arith.constant 2 : index
    %c0_9 = arith.constant 0 : index
    %c0_10 = arith.constant 0 : index
    %17 = vector.load %arg2[%c2, %c0_9, %c0_10] : memref<3x12x128xbf16, #tpu.memory_space<vmem>>, vector<1x12x128xbf16>
    %18 = vector.shape_cast %17 : vector<1x12x128xbf16> to vector<12x128xbf16>
    %cst_11 = arith.constant dense<0.000000e+00> : vector<128x128xf32>
    %19 = tpu.matmul %16, %18, %cst_11 {dimension_numbers = #tpu.dot_dimension_numbers<[1], [0], [0], [1], [0, 0, 1, 1], [], []>} : vector<128x12xbf16>, vector<12x128xbf16>, vector<128x128xf32> -> vector<128x128xf32>
    %20 = arith.addf %14, %19 : vector<128x128xf32>
    %cst_12 = arith.constant dense<0.000000e+00> : vector<128xf32>
    %21 = vector.multi_reduction <add>, %20, %cst_12 [0] : vector<128x128xf32> to vector<128xf32>
    %22 = vector.shape_cast %21 : vector<128xf32> to vector<1x128xf32>
    %23 = arith.mulf %20, %20 : vector<128x128xf32>
    %cst_13 = arith.constant dense<0.000000e+00> : vector<128xf32>
    %24 = vector.multi_reduction <add>, %23, %cst_13 [0] : vector<128x128xf32> to vector<128xf32>
    %25 = vector.shape_cast %24 : vector<128xf32> to vector<1x128xf32>
    %c0_14 = arith.constant 0 : index
    %c0_15 = arith.constant 0 : index
    %26 = vector.load %arg3[%c0_14, %c0_15] : memref<2x128xf32, #tpu.memory_space<vmem>>, vector<2x128xf32>
    %27 = tpu.concatenate %22, %25 in 0 : vector<1x128xf32>, vector<1x128xf32> -> vector<2x128xf32>
    %28 = arith.addf %26, %27 : vector<2x128xf32>
    %c0_16 = arith.constant 0 : index
    %c0_17 = arith.constant 0 : index
    %29 = vector.load %arg3[%c0_16, %c0_17] : memref<2x128xf32, #tpu.memory_space<vmem>>, vector<2x128xf32>
    tpu.vector_store %arg3[%c0_16, %c0_17], %28 {strides = array<i32>} : memref<2x128xf32, #tpu.memory_space<vmem>>, vector<2x128xf32>,
    return
  }
  func.func @transform_0(%arg0: i32) -> (i32, i32, i32) {
    %c0_i32 = arith.constant 0 : i32
    %c0_i32_0 = arith.constant 0 : i32
    %c0_i32_1 = arith.constant 0 : i32
    return %arg0, %c0_i32, %c0_i32_0 : i32, i32, i32
  }
  func.func @transform_1(%arg0: i32) -> (i32, i32, i32) {
    %c0_i32 = arith.constant 0 : i32
    %c0_i32_0 = arith.constant 0 : i32
    %c0_i32_1 = arith.constant 0 : i32
    %c0_i32_2 = arith.constant 0 : i32
    return %c0_i32, %c0_i32_0, %c0_i32_1 : i32, i32, i32
  }
  func.func @transform_2(%arg0: i32) -> (i32, i32) {
    %c0_i32 = arith.constant 0 : i32
    %c0_i32_0 = arith.constant 0 : i32
    %c0_i32_1 = arith.constant 0 : i32
    return %c0_i32, %c0_i32_0 : i32, i32
  }
}

module attributes {stable_mosaic.version = 11 : i64} {
  func.func @_apply_kernel(%arg0: i32, %arg1: memref<8x18x12xbf16, #tpu.memory_space<vmem>>, %arg2: memref<3x12x128xbf16, #tpu.memory_space<vmem>>, %arg3: memref<1x128xf32, #tpu.memory_space<vmem>>, %arg4: memref<1x128xf32, #tpu.memory_space<vmem>>, %arg5: memref<128x128xf32, #tpu.memory_space<vmem>>) attributes {dimension_semantics = [#tpu.dimension_semantics<parallel>], iteration_bounds = array<i64: 4>, scalar_prefetch = 0 : i64, scratch_operands = 0 : i64, tpu.core_type = #tpu.core_type<tc>, window_params = [{transform_indices = @transform_0, window_bounds = array<i64: 8, 18, 12>}, {pipeline_mode = #tpu.pipeline_mode<synchronous>, transform_indices = @transform_1, window_bounds = array<i64: 3, 12, 128>}, {pipeline_mode = #tpu.pipeline_mode<synchronous>, transform_indices = @transform_2, window_bounds = array<i64: 1, 128>}, {pipeline_mode = #tpu.pipeline_mode<synchronous>, transform_indices = @transform_3, window_bounds = array<i64: 1, 128>}, {transform_indices = @transform_4, window_bounds = array<i64: 128, 128>}]} {
    %c0 = arith.constant 0 : index
    %c0_0 = arith.constant 0 : index
    %c0_1 = arith.constant 0 : index
    %0 = vector.load %arg1[%c0, %c0_0, %c0_1] : memref<8x18x12xbf16, #tpu.memory_space<vmem>>, vector<8x18x12xbf16>
    %1 = vector.extract_strided_slice %0 {offsets = [0, 0, 0], sizes = [8, 16, 12], strides = [1, 1, 1]} : vector<8x18x12xbf16> to vector<8x16x12xbf16>
    %2 = vector.shape_cast %1 : vector<8x16x12xbf16> to vector<128x12xbf16>
    %c0_2 = arith.constant 0 : index
    %c0_3 = arith.constant 0 : index
    %c0_4 = arith.constant 0 : index
    %3 = vector.load %arg2[%c0_2, %c0_3, %c0_4] : memref<3x12x128xbf16, #tpu.memory_space<vmem>>, vector<1x12x128xbf16>
    %4 = vector.shape_cast %3 : vector<1x12x128xbf16> to vector<12x128xbf16>
    %cst = arith.constant dense<0.000000e+00> : vector<128x128xf32>
    %5 = tpu.matmul %2, %4, %cst {dimension_numbers = #tpu.dot_dimension_numbers<[1], [0], [0], [1], [0, 0, 1, 1], [], []>} : vector<128x12xbf16>, vector<12x128xbf16>, vector<128x128xf32> -> vector<128x128xf32>
    %6 = vector.extract_strided_slice %0 {offsets = [0, 1, 0], sizes = [8, 16, 12], strides = [1, 1, 1]} : vector<8x18x12xbf16> to vector<8x16x12xbf16>
    %7 = vector.shape_cast %6 : vector<8x16x12xbf16> to vector<128x12xbf16>
    %c1 = arith.constant 1 : index
    %c0_5 = arith.constant 0 : index
    %c0_6 = arith.constant 0 : index
    %8 = vector.load %arg2[%c1, %c0_5, %c0_6] : memref<3x12x128xbf16, #tpu.memory_space<vmem>>, vector<1x12x128xbf16>
    %9 = vector.shape_cast %8 : vector<1x12x128xbf16> to vector<12x128xbf16>
    %cst_7 = arith.constant dense<0.000000e+00> : vector<128x128xf32>
    %10 = tpu.matmul %7, %9, %cst_7 {dimension_numbers = #tpu.dot_dimension_numbers<[1], [0], [0], [1], [0, 0, 1, 1], [], []>} : vector<128x12xbf16>, vector<12x128xbf16>, vector<128x128xf32> -> vector<128x128xf32>
    %11 = arith.addf %5, %10 : vector<128x128xf32>
    %12 = vector.extract_strided_slice %0 {offsets = [0, 2, 0], sizes = [8, 16, 12], strides = [1, 1, 1]} : vector<8x18x12xbf16> to vector<8x16x12xbf16>
    %13 = vector.shape_cast %12 : vector<8x16x12xbf16> to vector<128x12xbf16>
    %c2 = arith.constant 2 : index
    %c0_8 = arith.constant 0 : index
    %c0_9 = arith.constant 0 : index
    %14 = vector.load %arg2[%c2, %c0_8, %c0_9] : memref<3x12x128xbf16, #tpu.memory_space<vmem>>, vector<1x12x128xbf16>
    %15 = vector.shape_cast %14 : vector<1x12x128xbf16> to vector<12x128xbf16>
    %cst_10 = arith.constant dense<0.000000e+00> : vector<128x128xf32>
    %16 = tpu.matmul %13, %15, %cst_10 {dimension_numbers = #tpu.dot_dimension_numbers<[1], [0], [0], [1], [0, 0, 1, 1], [], []>} : vector<128x12xbf16>, vector<12x128xbf16>, vector<128x128xf32> -> vector<128x128xf32>
    %17 = arith.addf %11, %16 : vector<128x128xf32>
    %c0_11 = arith.constant 0 : index
    %c0_12 = arith.constant 0 : index
    %18 = vector.load %arg3[%c0_11, %c0_12] : memref<1x128xf32, #tpu.memory_space<vmem>>, vector<1x128xf32>
    %19 = vector.broadcast %18 : vector<1x128xf32> to vector<128x128xf32>
    %20 = arith.mulf %17, %19 : vector<128x128xf32>
    %c0_13 = arith.constant 0 : index
    %c0_14 = arith.constant 0 : index
    %21 = vector.load %arg4[%c0_13, %c0_14] : memref<1x128xf32, #tpu.memory_space<vmem>>, vector<1x128xf32>
    %22 = vector.broadcast %21 : vector<1x128xf32> to vector<128x128xf32>
    %23 = arith.addf %20, %22 : vector<128x128xf32>
    %cst_15 = arith.constant 0.000000e+00 : f32
    %24 = vector.broadcast %cst_15 : f32 to vector<128x128xf32>
    %25 = arith.maximumf %23, %24 : vector<128x128xf32>
    %c0_16 = arith.constant 0 : index
    %c0_17 = arith.constant 0 : index
    %26 = vector.load %arg5[%c0_16, %c0_17] : memref<128x128xf32, #tpu.memory_space<vmem>>, vector<128x128xf32>
    tpu.vector_store %arg5[%c0_16, %c0_17], %25 {strides = array<i32>} : memref<128x128xf32, #tpu.memory_space<vmem>>, vector<128x128xf32>,
    return
  }
  func.func @transform_0(%arg0: i32) -> (i32, i32, i32) {
    %c0_i32 = arith.constant 0 : i32
    %c0_i32_0 = arith.constant 0 : i32
    %c0_i32_1 = arith.constant 0 : i32
    return %arg0, %c0_i32, %c0_i32_0 : i32, i32, i32
  }
  func.func @transform_1(%arg0: i32) -> (i32, i32, i32) {
    %c0_i32 = arith.constant 0 : i32
    %c0_i32_0 = arith.constant 0 : i32
    %c0_i32_1 = arith.constant 0 : i32
    %c0_i32_2 = arith.constant 0 : i32
    return %c0_i32, %c0_i32_0, %c0_i32_1 : i32, i32, i32
  }
  func.func @transform_2(%arg0: i32) -> (i32, i32) {
    %c0_i32 = arith.constant 0 : i32
    %c0_i32_0 = arith.constant 0 : i32
    %c0_i32_1 = arith.constant 0 : i32
    return %c0_i32, %c0_i32_0 : i32, i32
  }
  func.func @transform_3(%arg0: i32) -> (i32, i32) {
    %c0_i32 = arith.constant 0 : i32
    %c0_i32_0 = arith.constant 0 : i32
    %c0_i32_1 = arith.constant 0 : i32
    return %c0_i32, %c0_i32_0 : i32, i32
  }
  func.func @transform_4(%arg0: i32) -> (i32, i32) {
    %c0_i32 = arith.constant 0 : i32
    %c0_i32_0 = arith.constant 0 : i32
    return %arg0, %c0_i32 : i32, i32
  }
}

</mosaic_0001>

<bundles_post_ra>
// kernel: conv_block.2
= control target key start
LH: loop header
LB: loop body
LE: loop exit
PB: predicated region body
PF: predicated region fallthrough
CT: control target
= control target key end

     0   :  { %s1011_s9 = smov 0   ;;  %s1246_s0 = inlined_call_operand.vmem [shape: bf16[32,18,12], index: 0, kind: input, shape index: {}]   ;;  %s1247_s1 = inlined_call_operand.vmem [shape: bf16[3,12,128], index: 1, kind: input, shape index: {}]   ;;  %s1248_s2 = inlined_call_operand.vmem [shape: f32[2,128], index: 2, kind: output, shape index: {}]  }
   0x1 LB: > { %s874_s10 = sadd.s32 4294967295, %s993_s9   ;;  %p877_p0 = scmp.ge.s32.totalorder %s993_s9, 1  ;;  %s993_s9 = sphi %s1011_s9, %s12_s9  }
   0x2   : > { %p109_p1 = scmp.lt.s32.totalorder %s993_s9, 5 }
   0x4   : > { %p110_p2 = pnand %p877_p0, %p109_p1 }
   0x5   : > { %s878_s11 = sshll.u32 (!%p110_p2), %s874_s10, 3  ;;  %p880_p4 = scmp.ne.s32.totalorder (!%p110_p2), %s874_s10, 0 }
   0x6   : > { %113 = sbr.rel (%p110_p2) target bundleno = 284 (0x11c), region = 28  ;;  %p128_p3 = scmp.lt.s32.totalorder (!%p110_p2), %s878_s11, 31 }
   0xb   : > { %s1254_s11 = smov (!%p128_p3, %s878_s11), 31  ;;  %138 = sbr.rel (%p880_p4) target bundleno = 18 (0x12), region = 32 }
   0xc   : > { %s977_s12 = smul.u32 12, %s1254_s11 }
   0xe   : > { %s1022_s15 = scalar_lea.vmem %s1246_s0, %s977_s12 }
  0x10   : > { %v995_v0 = vmov 0.0  }
  0x11   : > { %139 = vst [vmem:[%s1248_s2] sm:$0x3] %v995_v0 }
  0x12 PF: > { %v929_v1 = vld [vmem:[%s1247_s1] sm:$0xf]  ;;  %v971_v2 = vld [vmem:[%s1247_s1] sm:$0x30]  ;;  %vm418_vm0 = vcmask 1045504   ;;  %vm393_vm1 = vcmask 97280  }
  0x13   : > { %v930_v3 = vor.u32 %v971_v2, %v929_v1  ;;  %v963_v4 = vld [vmem:[%s1022_s15] sm:$0xff]  ;;  %v951_v5 = vld [vmem:[%s1247_s1 + $0x10] sm:$0xf]  ;;  %v973_v6 = vld [vmem:[%s1247_s1 + $0x10] sm:$0x30]  ;;  %vm600_vm2 = vcmask 1042432  }
  0x14   : > { %v952_v7 = vor.u32 %v973_v6, %v951_v5  ;;  %v140_v8 = vld [vmem:[%s1022_s15] sm:$0xf]  ;;  %v141_v9 = vld [vmem:[%s1022_s15 + $0x4] sm:$0xf]  ;;  %v142_v10 = vld [vmem:[%s1022_s15 + $0x8] sm:$0x1] }
  0x15   : > { %v541_v11 = vsel %vm418_vm0, %v930_v3, 0  ;;  %vm601_vm3 = vcmask 1046532   ;;  %v939_v12 = vrot.slane %v140_v8, 9  ;;  %v605_v13 = vrot.slane %v141_v9, 5  ;;  %v885_v14 = vld [vmem:[%s1247_s1 + $0x8] sm:$0xf] }
  0x16   : > { %550 = vmatpush.bf16.msra.mxu1 %v541_v11  ;;  %v1048_v15 = vsel %vm418_vm0, %v952_v7, 0  ;;  %vm1050_vm4 = vmor %vm600_vm2, %vm601_vm3  ;;  %v608_v17 = vrot.slane %v142_v10, 5  ;;  %v972_v18 = vld [vmem:[%s1247_s1 + $0x8] sm:$0x30]  ;;  %vm166_vm5 = vsmask.f32 3328 }
  0x17   : > { %725 = vmatpush.bf16.msra.mxu2 %v1048_v15  ;;  %v606_v19 = vsel %vm1050_vm4, %v939_v12, %v605_v13  ;;  %v607_v20 = vrot.slane %v605_v13, 4  ;;  %v886_v21 = vor.u32 %v972_v18, %v885_v14  ;;  %vm167_vm6 = vsmask.f32 7440  ;;  %v1061_v26 = vld [vmem:[%s1022_s15 + $0x48] sm:$0xf] }
  0x18   : > { %v662_v22 = vunpack.c.l.b16 %v606_v19  ;;  %v170_v23 = vshrl.u32 %v140_v8, 16  ;;  %v173_v24 = vshll.u32 %v140_v8, 16  ;;  %v179_v25 = vshll.u32 %v141_v9, 16  ;;  %v1068_v31 = vld [vmem:[%s1022_s15 + $0x4c] sm:$0xf]  ;;  %vm1079_vm7 = vmor %vm166_vm5, %vm167_vm6 }
  0x19   : > { %931 = vmatmul.msk.bf16.vlgmr.msra.gmra.mxu1 %vm393_vm1, %v963_v4  ;;  %v609_v27 = vsel %vm1050_vm4, %v607_v20, %v608_v17  ;;  %v420_v28 = vsel %vm418_vm0, %v886_v21, 0  ;;  %v183_v29 = vshrl.u32 %v141_v9, 16  ;;  %v189_v30 = vshll.u32 %v142_v10, 16  ;;  %v1071_v36 = vld [vmem:[%s1022_s15 + $0x50] sm:$0x1] }
  0x1a   : > { %v663_v32 = vunpack.c.l.b16 %v609_v27  ;;  %429 = vmatpush.bf16.msra.mxu0 %v420_v28  ;;  %974 = vmatpush.bf16.msra.mxu3 %v420_v28  ;;  %v172_v33 = vrot.slane %v170_v23, 4  ;;  %v175_v34 = vrot.slane %v173_v24, 5  ;;  %v181_v35 = vrot.slane %v179_v25, 5  ;;  %v143_v53 = vld [vmem:[%s1022_s15 + $0xc] sm:$0xf] }
  0x1b   : > { %v185_v37 = vrot.slane %v183_v29, 4  ;;  %v191_v38 = vrot.slane %v189_v30, 5  ;;  %v314_v39 = vshrl.u32 %v1061_v26, 16  ;;  %v317_v40 = vshll.u32 %v1061_v26, 16  ;;  %v144_v56 = vld [vmem:[%s1022_s15 + $0x10] sm:$0xf] }
  0x1c   : > { %v678_v41 = vpack.c.b16 %v663_v32, %v662_v22  ;;  %v176_v42 = vor.u32 %v175_v34, %v172_v33  ;;  %v323_v43 = vshll.u32 %v1068_v31, 16  ;;  %v327_v44 = vshrl.u32 %v1068_v31, 16  ;;  %v145_v57 = vld [vmem:[%s1022_s15 + $0x14] sm:$0x1]  ;;  %v964_v17 = vld [vmem:[%s1022_s15 + $0xc] sm:$0xff] }
  0x1d   : > { %v186_v46 = vor.u32 %v185_v37, %v181_v35  ;;  %v316_v47 = vrot.slane %v314_v39, 4  ;;  %v319_v48 = vrot.slane %v317_v40, 5  ;;  %v333_v49 = vshll.u32 %v1071_v36, 16  ;;  %v1099_v13 = vld [vmem:[%s1022_s15 + $0x54] sm:$0xf] }
  0x1e   : > { %975 = vmatpush.bf16.msrb.mxu3 %v541_v11  ;;  %953 = vmatmul.msk.bf16.vlgmr.msra.gmra.mxu2 %vm393_vm1, %v678_v41  ;;  %v177_v50 = vrot.slane %v176_v42, 4  ;;  %v325_v51 = vrot.slane %v323_v43, 5  ;;  %v329_v52 = vrot.slane %v327_v44, 4  ;;  %v940_v61 = vrot.slane %v143_v53, 9  ;;  %v1104_v25 = vld [vmem:[%s1022_s15 + $0x58] sm:$0xf] }
  0x1f   : > { %v187_v54 = vrot.slane %v186_v46, 4  ;;  %v320_v55 = vor.u32 %v319_v48, %v316_v47  ;;  %v335_v60 = vrot.slane %v333_v49, 5  ;;  %v612_v3 = vrot.slane %v144_v56, 5  ;;  %v1109_v29 = vld [vmem:[%s1022_s15 + $0x5c] sm:$0x1] }
  0x20   : > { %v182_v58 = vsel %vm1079_vm7, %v177_v50, %v181_v35  ;;  %v330_v59 = vor.u32 %v329_v52, %v325_v51  ;;  %v615_v4 = vrot.slane %v145_v57, 5  ;;  %v194_v6 = vshrl.u32 %v143_v53, 16  ;;  %v147_v42 = vld [vmem:[%s1022_s15 + $0x1c] sm:$0xf]  ;;  %v148_v52 = vld [vmem:[%s1022_s15 + $0x20] sm:$0x1] }
  0x21   : > { %v192_v62 = vsel %vm1079_vm7, %v187_v54, %v191_v38  ;;  %v364_v63 = vunpack.c.l.b16 %v182_v58  ;;  %v321_v0 = vrot.slane %v320_v55, 4  ;;  %v197_v7 = vshll.u32 %v143_v53, 16 }
  0x22   : > { %v365_v1 = vunpack.c.l.b16 %v192_v62  ;;  %v331_v2 = vrot.slane %v330_v59, 4  ;;  %v203_v8 = vshll.u32 %v144_v56, 16  ;;  %v613_v12 = vsel %vm1050_vm4, %v940_v61, %v612_v3 }
  0x23   : > { %v326_v5 = vsel %vm1079_vm7, %v321_v0, %v325_v51  ;;  %v614_v18 = vrot.slane %v612_v3, 4  ;;  %v664_v19 = vunpack.c.l.b16 %v613_v12  ;;  %v196_v20 = vrot.slane %v194_v6, 4  ;;  %v146_v51 = vld [vmem:[%s1022_s15 + $0x18] sm:$0xf] }
  0x24   : > { %v380_v9 = vpack.c.b16 %v365_v1, %v364_v63  ;;  %v336_v10 = vsel %vm1079_vm7, %v331_v2, %v335_v60  ;;  %v376_v11 = vunpack.c.l.b16 %v326_v5  ;;  %v199_v21 = vrot.slane %v197_v7, 5 }
  0x25   : > { %v377_v14 = vunpack.c.l.b16 %v336_v10  ;;  %v205_v22 = vrot.slane %v203_v8, 5  ;;  %v207_v23 = vshrl.u32 %v144_v56, 16  ;;  %v213_v24 = vshll.u32 %v145_v57, 16 }
  0x26   : > { %887 = vmatmul.msk.bf16.vlgmr.msra.gmra.mxu0 %vm393_vm1, %v380_v9  ;;  %v616_v28 = vsel %vm1050_vm4, %v614_v18, %v615_v4  ;;  %v338_v30 = vshrl.u32 %v1099_v13, 16  ;;  %v341_v32 = vshll.u32 %v1099_v13, 16  ;;  %v200_v34 = vor.u32 %v199_v21, %v196_v20 }
  0x27   : > { %v386_v27 = vpack.c.b16 %v377_v14, %v376_v11  ;;  %v665_v33 = vunpack.c.l.b16 %v616_v28  ;;  %v209_v35 = vrot.slane %v207_v23, 4  ;;  %v215_v37 = vrot.slane %v213_v24, 5  ;;  %v149_v28 = vld [vmem:[%s1022_s15 + $0x24] sm:$0xf] }
  0x28   : > { %v340_v38 = vrot.slane %v338_v30, 4  ;;  %v343_v39 = vrot.slane %v341_v32, 5  ;;  %v347_v40 = vshll.u32 %v1104_v25, 16  ;;  %v351_v41 = vshrl.u32 %v1104_v25, 16  ;;  %v150_v30 = vld [vmem:[%s1022_s15 + $0x28] sm:$0xf] }
  0x29   : > { %893 = vmatmul.msk.bf16.vlgmr.msra.gmra.mxu3 %vm393_vm1, %v386_v27  ;;  %932 = vmatmul.msk.bf16.gmra.mxu1 %vm393_vm1, %v964_v17  ;;  %v679_v43 = vpack.c.b16 %v665_v33, %v664_v19  ;;  %v201_v44 = vrot.slane %v200_v34, 4  ;;  %v210_v46 = vor.u32 %v209_v35, %v205_v22  ;;  %v357_v47 = vshll.u32 %v1109_v29, 16 }
  0x2a   : > { %976 = vmatpush.bf16.msra.mxu3 %v1048_v15  ;;  %v344_v48 = vor.u32 %v343_v39, %v340_v38  ;;  %v349_v49 = vrot.slane %v347_v40, 5  ;;  %v353_v50 = vrot.slane %v351_v41, 4  ;;  %v619_v55 = vrot.slane %v147_v42, 5  ;;  %v151_v40 = vld [vmem:[%s1022_s15 + $0x2c] sm:$0x1] }
  0x2b   : > { %v206_v53 = vsel %vm1079_vm7, %v201_v44, %v205_v22  ;;  %v211_v54 = vrot.slane %v210_v46, 4  ;;  %v359_v58 = vrot.slane %v357_v47, 5  ;;  %v941_v59 = vrot.slane %v146_v51, 9  ;;  %v965_v22 = vld [vmem:[%s1022_s15 + $0x18] sm:$0xff] }
  0x2c   : > { %v345_v56 = vrot.slane %v344_v48, 4  ;;  %v354_v57 = vor.u32 %v353_v50, %v349_v49  ;;  %v366_v15 = vunpack.c.l.b16 %v206_v53  ;;  %v622_v61 = vrot.slane %v148_v52, 5 }
  0x2d   : > { %v216_v60 = vsel %vm1079_vm7, %v211_v54, %v215_v37  ;;  %v218_v62 = vshrl.u32 %v146_v51, 16  ;;  %v621_v2 = vrot.slane %v619_v55, 4  ;;  %v221_v4 = vshll.u32 %v146_v51, 16 }
  0x2e   : > { %954 = vmatmul.msk.bf16.gmra.mxu2 %vm393_vm1, %v679_v43  ;;  %v367_v63 = vunpack.c.l.b16 %v216_v60  ;;  %v350_v0 = vsel %vm1079_vm7, %v345_v56, %v349_v49  ;;  %v355_v1 = vrot.slane %v354_v57, 4  ;;  %v227_v7 = vshll.u32 %v147_v42, 16 }
  0x2f   : > { %v220_v3 = vrot.slane %v218_v62, 4  ;;  %v378_v6 = vunpack.c.l.b16 %v350_v0  ;;  %v223_v10 = vrot.slane %v221_v4, 5  ;;  %v231_v11 = vshrl.u32 %v147_v42, 16  ;;  %v969_v0 = vld [vmem:[%s1022_s15 + $0x48] sm:$0xff] }
  0x30   : > { %v360_v5 = vsel %vm1079_vm7, %v355_v1, %v359_v58  ;;  %v381_v8 = vpack.c.b16 %v367_v63, %v366_v15  ;;  %v620_v12 = vsel %vm1050_vm4, %v941_v59, %v619_v55  ;;  %v623_v14 = vsel %vm1050_vm4, %v621_v2, %v622_v61 }
  0x31   : > { %v379_v9 = vunpack.c.l.b16 %v360_v5  ;;  %v229_v17 = vrot.slane %v227_v7, 5  ;;  %v237_v18 = vshll.u32 %v148_v52, 16  ;;  %v224_v19 = vor.u32 %v223_v10, %v220_v3 }
  0x32   : > { %v233_v20 = vrot.slane %v231_v11, 4  ;;  %v666_v23 = vunpack.c.l.b16 %v620_v12  ;;  %v667_v24 = vunpack.c.l.b16 %v623_v14  ;;  %v626_v35 = vrot.slane %v150_v30, 5 }
  0x33   : > { %v387_v21 = vpack.c.b16 %v379_v9, %v378_v6  ;;  %v225_v32 = vrot.slane %v224_v19, 4  ;;  %v239_v33 = vrot.slane %v237_v18, 5  ;;  %v242_v37 = vshrl.u32 %v149_v28, 16  ;;  %v153_v9 = vld [vmem:[%s1022_s15 + $0x34] sm:$0xf] }
  0x34   : > { %v234_v27 = vor.u32 %v233_v20, %v229_v17  ;;  %v245_v38 = vshll.u32 %v149_v28, 16  ;;  %v680_v39 = vpack.c.b16 %v667_v24, %v666_v23  ;;  %v251_v41 = vshll.u32 %v150_v30, 16 }
  0x35   : > { %v255_v42 = vshrl.u32 %v150_v30, 16  ;;  %v230_v43 = vsel %vm1079_vm7, %v225_v32, %v229_v17  ;;  %v647_v46 = vrot.slane %v1068_v31, 5  ;;  %v942_v47 = vrot.slane %v149_v28, 9 }
  0x36   : > { %888 = vmatmul.msk.bf16.gmra.mxu0 %vm393_vm1, %v381_v8  ;;  %v235_v34 = vrot.slane %v234_v27, 4  ;;  %v628_v48 = vrot.slane %v626_v35, 4  ;;  %v629_v49 = vrot.slane %v151_v40, 5  ;;  %v244_v50 = vrot.slane %v242_v37, 4  ;;  %v152_v8 = vld [vmem:[%s1022_s15 + $0x30] sm:$0xf] }
  0x37   : > { %v247_v51 = vrot.slane %v245_v38, 5  ;;  %v368_v52 = vunpack.c.l.b16 %v230_v43  ;;  %v253_v54 = vrot.slane %v251_v41, 5  ;;  %v257_v55 = vrot.slane %v255_v42, 4 }
  0x38   : > { %v240_v44 = vsel %vm1079_vm7, %v235_v34, %v239_v33  ;;  %v945_v56 = vrot.slane %v1061_v26, 9  ;;  %v649_v57 = vrot.slane %v647_v46, 4  ;;  %v650_v58 = vrot.slane %v1071_v36, 5  ;;  %v966_v36 = vld [vmem:[%s1022_s15 + $0x24] sm:$0xff] }
  0x39   : > { %894 = vmatmul.msk.bf16.gmra.mxu3 %vm393_vm1, %v387_v21  ;;  %933 = vmatmul.msk.bf16.gmra.mxu1 %vm393_vm1, %v965_v22  ;;  %v369_v53 = vunpack.c.l.b16 %v240_v44  ;;  %v627_v31 = vsel %vm1050_vm4, %v942_v47, %v626_v35  ;;  %v630_v59 = vsel %vm1050_vm4, %v628_v48, %v629_v49  ;;  %v248_v15 = vor.u32 %v247_v51, %v244_v50  ;;  %v154_v22 = vld [vmem:[%s1022_s15 + $0x38] sm:$0x1]  ;;  %v967_v50 = vld [vmem:[%s1022_s15 + $0x30] sm:$0xff] }
  0x3a   : > { %v258_v61 = vor.u32 %v257_v55, %v253_v54  ;;  %v261_v62 = vshll.u32 %v151_v40, 16  ;;  %v648_v63 = vsel %vm1050_vm4, %v945_v56, %v647_v46  ;;  %v651_v26 = vsel %vm1050_vm4, %v649_v57, %v650_v58  ;;  %v970_v49 = vld [vmem:[%s1022_s15 + $0x54] sm:$0xff]  ;;  %v156_v56 = vld [vmem:[%s1022_s15 + $0x40] sm:$0xf]  ;;  %v155_v58 = vld [vmem:[%s1022_s15 + $0x3c] sm:$0xf] }
  0x3b   : > { %v382_v60 = vpack.c.b16 %v369_v53, %v368_v52  ;;  %v668_v1 = vunpack.c.l.b16 %v627_v31  ;;  %v669_v2 = vunpack.c.l.b16 %v630_v59  ;;  %v674_v3 = vunpack.c.l.b16 %v648_v63 }
  0x3c   : > { %v675_v4 = vunpack.c.l.b16 %v651_v26  ;;  %v249_v5 = vrot.slane %v248_v15, 4  ;;  %v259_v6 = vrot.slane %v258_v61, 4  ;;  %v263_v7 = vrot.slane %v261_v62, 5  ;;  %v157_v61 = vld [vmem:[%s1022_s15 + $0x44] sm:$0x1] }
  0x3d   : > { %v681_v11 = vpack.c.b16 %v669_v2, %v668_v1  ;;  %v266_v12 = vshrl.u32 %v152_v8, 16  ;;  %v269_v14 = vshll.u32 %v152_v8, 16  ;;  %v275_v19 = vshll.u32 %v153_v9, 16 }
  0x3e   : > { %955 = vmatmul.msk.bf16.gmra.mxu2 %vm393_vm1, %v680_v39  ;;  %v1163_v10 = vpack.c.b16 %v675_v4, %v674_v3  ;;  %v254_v17 = vsel %vm1079_vm7, %v249_v5, %v253_v54  ;;  %v264_v18 = vsel %vm1079_vm7, %v259_v6, %v263_v7  ;;  %v279_v20 = vshrl.u32 %v153_v9, 16 }
  0x3f   : > { %v633_v21 = vrot.slane %v153_v9, 5  ;;  %v943_v23 = vrot.slane %v152_v8, 9  ;;  %v370_v24 = vunpack.c.l.b16 %v254_v17  ;;  %v371_v27 = vunpack.c.l.b16 %v264_v18 }
  0x40   : > { %v268_v28 = vrot.slane %v266_v12, 4  ;;  %v271_v30 = vrot.slane %v269_v14, 5  ;;  %v277_v32 = vrot.slane %v275_v19, 5  ;;  %v281_v33 = vrot.slane %v279_v20, 4  ;;  %v968_v19 = vld [vmem:[%s1022_s15 + $0x3c] sm:$0xff] }
  0x41   : > { %v635_v34 = vrot.slane %v633_v21, 4  ;;  %v636_v35 = vrot.slane %v154_v22, 5  ;;  %v654_v37 = vrot.slane %v1104_v25, 5  ;;  %v383_v38 = vpack.c.b16 %v371_v27, %v370_v24 }
  0x42   : > { %v634_v39 = vsel %vm1050_vm4, %v943_v23, %v633_v21  ;;  %v272_v40 = vor.u32 %v271_v30, %v268_v28  ;;  %v285_v41 = vshll.u32 %v154_v22, 16  ;;  %v282_v42 = vor.u32 %v281_v33, %v277_v32 }
  0x43   : > { %v946_v43 = vrot.slane %v1099_v13, 9  ;;  %v656_v44 = vrot.slane %v654_v37, 4  ;;  %v657_v46 = vrot.slane %v1109_v29, 5  ;;  %v637_v47 = vsel %vm1050_vm4, %v635_v34, %v636_v35 }
  0x44   : > { %v670_v51 = vunpack.c.l.b16 %v634_v39  ;;  %v671_v53 = vunpack.c.l.b16 %v637_v47  ;;  %v273_v29 = vrot.slane %v272_v40, 4  ;;  %v283_v54 = vrot.slane %v282_v42, 4 }
  0x45   : > { %v655_v25 = vsel %vm1050_vm4, %v946_v43, %v654_v37  ;;  %v658_v48 = vsel %vm1050_vm4, %v656_v44, %v657_v46  ;;  %v287_v55 = vrot.slane %v285_v41, 5  ;;  %v640_v15 = vrot.slane %v156_v56, 5 }
  0x46   : > { %889 = vmatmul.msk.bf16.gmra.mxu0 %vm393_vm1, %v382_v60  ;;  %v676_v52 = vunpack.c.l.b16 %v655_v25  ;;  %v677_v13 = vunpack.c.l.b16 %v658_v48  ;;  %v682_v31 = vpack.c.b16 %v671_v53, %v670_v51  ;;  %v278_v59 = vsel %vm1079_vm7, %v273_v29, %v277_v32 }
  0x47   : > { %v288_v60 = vsel %vm1079_vm7, %v283_v54, %v287_v55  ;;  %v290_v62 = vshrl.u32 %v155_v58, 16  ;;  %v293_v63 = vshll.u32 %v155_v58, 16  ;;  %v299_v26 = vshll.u32 %v156_v56, 16 }
  0x48   : > { %v685_v57 = vpack.c.b16 %v677_v13, %v676_v52  ;;  %v373_v1 = vunpack.c.l.b16 %v288_v60  ;;  %v944_v2 = vrot.slane %v155_v58, 9  ;;  %v642_v3 = vrot.slane %v640_v15, 4 }
  0x49   : > { %937 = vmatmul.msk.bf16.vlgmr.msrb.gmra.mxu3 %vm393_vm1, %v969_v0  ;;  %934 = vmatmul.msk.bf16.gmra.mxu1 %vm393_vm1, %v966_v36  ;;  %v303_v0 = vshrl.u32 %v156_v56, 16  ;;  %v372_v36 = vunpack.c.l.b16 %v278_v59  ;;  %v643_v4 = vrot.slane %v157_v61, 5  ;;  %v292_v5 = vrot.slane %v290_v62, 4 }
  0x4a   : > { %v295_v6 = vrot.slane %v293_v63, 5  ;;  %v301_v7 = vrot.slane %v299_v26, 5  ;;  %v309_v18 = vshll.u32 %v157_v61, 16  ;;  %vm842_vm8 = vcmask 1040384  }
  0x4b   : > { %v305_v8 = vrot.slane %v303_v0, 4  ;;  %v384_v9 = vpack.c.b16 %v373_v1, %v372_v36  ;;  %v644_v12 = vsel %vm1050_vm4, %v642_v3, %v643_v4 }
  0x4c   : > { %v296_v14 = vor.u32 %v295_v6, %v292_v5  ;;  %v673_v21 = vunpack.c.l.b16 %v644_v12  ;;  %v311_v24 = vrot.slane %v309_v18, 5 }
  0x4d   : > { %v306_v17 = vor.u32 %v305_v8, %v301_v7 }
  0x4e   : > { %956 = vmatmul.msk.bf16.gmra.mxu2 %vm393_vm1, %v681_v11  ;;  %v641_v11 = vsel %vm1050_vm4, %v944_v2, %v640_v15  ;;  %v297_v22 = vrot.slane %v296_v14, 4 }
  0x4f   : > { %v672_v20 = vunpack.c.l.b16 %v641_v11  ;;  %v307_v23 = vrot.slane %v306_v17, 4 }
  0x50   : > { %v302_v16 = vsel %vm1079_vm7, %v297_v22, %v301_v7 }
  0x51   : > { %v683_v27 = vpack.c.b16 %v673_v21, %v672_v20  ;;  %v312_v28 = vsel %vm1079_vm7, %v307_v23, %v311_v24  ;;  %v374_v30 = vunpack.c.l.b16 %v302_v16 }
  0x52   : > { %v375_v32 = vunpack.c.l.b16 %v312_v28 }
  0x54   : > { %v385_v33 = vpack.c.b16 %v375_v32, %v374_v30 }
  0x56   : > { %890 = vmatmul.msk.bf16.gmra.mxu0 %vm393_vm1, %v383_v38 }
  0x59   : > { %938 = vmatmul.msk.bf16.gmra.mxu3 %vm393_vm1, %v970_v49  ;;  %935 = vmatmul.msk.bf16.gmra.mxu1 %vm393_vm1, %v967_v50 }
  0x5e   : > { %957 = vmatmul.msk.bf16.gmra.mxu2 %vm393_vm1, %v682_v31 }
  0x66   : > { %891 = vmatmul.msk.bf16.gmra.mxu0 %vm393_vm1, %v384_v9 }
  0x69   : > { %959 = vmatmul.msk.bf16.vlgmr.msra.gmra.mxu3 %vm393_vm1, %v1163_v10  ;;  %936 = vmatmul.msk.bf16.gmra.mxu1 %vm393_vm1, %v968_v19 }
  0x6e   : > { %958 = vmatmul.msk.bf16.gmra.mxu2 %vm393_vm1, %v683_v27 }
  0x76   : > { %892 = vmatmul.msk.bf16.gmra.mxu0 %vm393_vm1, %v385_v33 }
  0x79   : > { %960 = vmatmul.msk.bf16.gmra.mxu3 %vm393_vm1, %v685_v57 }
  0x96   : > { %v552_v34 = vpop.f32.mrf.mxu1 }
  0x9e   : > { %v554_v10 = vpop.f32.mrf.mxu1 }
  0xa1   : > { %v727_v35 = vpop.f32.mrf.mxu2 }
  0xa3   : > { %v431_v37 = vpop.f32.mrf.mxu0 }
  0xa4   : > { %v553_v38 = vadd.f32 %v552_v34, %v431_v37 }
  0xa6   : > { %v767_v39 = vadd.f32 %v727_v35, %v553_v38  ;;  %v557_v40 = vpop.f32.mrf.mxu1 }
  0xa8   : > { %v804_v12 = vmul.f32 %v767_v39, %v767_v39 }
  0xa9   : > { %v729_v41 = vpop.f32.mrf.mxu2 }
  0xab   : > { %v433_v42 = vpop.f32.mrf.mxu0 }
  0xac   : > { %v1213_v45 = vpop.f32.mrf.mxu3  ;;  %v555_v63 = vadd.f32 %v554_v10, %v433_v42 }
  0xae   : > { %v559_v43 = vpop.f32.mrf.mxu1  ;;  %v768_v2 = vadd.f32 %v729_v41, %v555_v63 }
  0xb0   : > { %v805_v7 = vmul.f32 %v768_v2, %v768_v2  ;;  %v783_v19 = vadd.f32 %v768_v2, %v767_v39 }
  0xb1   : > { %v732_v44 = vpop.f32.mrf.mxu2 }
  0xb2   : > { %v820_v22 = vadd.f32 %v805_v7, %v804_v12 }
  0xb3   : > { %v436_v46 = vpop.f32.mrf.mxu0 }
  0xb4   : > { %v1215_v47 = vpop.f32.mrf.mxu3  ;;  %v558_v0 = vadd.f32 %v557_v40, %v436_v46 }
  0xb6   : > { %v562_v25 = vpop.f32.mrf.mxu1  ;;  %v769_v5 = vadd.f32 %v732_v44, %v558_v0 }
  0xb8   : > { %v806_v14 = vmul.f32 %v769_v5, %v769_v5  ;;  %v784_v24 = vadd.f32 %v783_v19, %v769_v5 }
  0xb9   : > { %v734_v48 = vpop.f32.mrf.mxu2 }
  0xba   : > { %v821_v28 = vadd.f32 %v820_v22, %v806_v14 }
  0xbb   : > { %v438_v49 = vpop.f32.mrf.mxu0 }
  0xbc   : > { %v1217_v50 = vpop.f32.mrf.mxu3  ;;  %v560_v3 = vadd.f32 %v559_v43, %v438_v49 }
  0xbe   : > { %v564_v51 = vpop.f32.mrf.mxu1  ;;  %v770_v8 = vadd.f32 %v734_v48, %v560_v3 }
  0xc0   : > { %v807_v23 = vmul.f32 %v770_v8, %v770_v8  ;;  %v785_v32 = vadd.f32 %v784_v24, %v770_v8 }
  0xc1   : > { %v737_v52 = vpop.f32.mrf.mxu2 }
  0xc2   : > { %v822_v35 = vadd.f32 %v821_v28, %v807_v23 }
  0xc3   : > { %v441_v13 = vpop.f32.mrf.mxu0 }
  0xc4   : > { %v1219_v53 = vpop.f32.mrf.mxu3  ;;  %v563_v6 = vadd.f32 %v562_v25, %v441_v13 }
  0xc6   : > { %v567_v29 = vpop.f32.mrf.mxu1  ;;  %v771_v17 = vadd.f32 %v737_v52, %v563_v6 }
  0xc8   : > { %v808_v30 = vmul.f32 %v771_v17, %v771_v17  ;;  %v786_v38 = vadd.f32 %v785_v32, %v771_v17 }
  0xc9   : > { %v739_v54 = vpop.f32.mrf.mxu2 }
  0xca   : > { %v823_v39 = vadd.f32 %v822_v35, %v808_v30 }
  0xcb   : > { %v443_v55 = vpop.f32.mrf.mxu0 }
  0xcc   : > { %v1221_v56 = vpop.f32.mrf.mxu3  ;;  %v565_v11 = vadd.f32 %v564_v51, %v443_v55 }
  0xcd   : > { %v583_v63 = vadd.f32 %v1221_v56, %v1213_v45 }
  0xce   : > { %v569_v58 = vpop.f32.mrf.mxu1  ;;  %v772_v27 = vadd.f32 %v739_v54, %v565_v11 }
  0xd0   : > { %v809_v40 = vmul.f32 %v772_v27, %v772_v27  ;;  %v787_v44 = vadd.f32 %v786_v38, %v772_v27 }
  0xd1   : > { %v742_v57 = vpop.f32.mrf.mxu2 }
  0xd2   : > { %v824_v51 = vadd.f32 %v823_v39, %v809_v40 }
  0xd3   : > { %v446_v31 = vpop.f32.mrf.mxu0 }
  0xd4   : > { %v1223_v59 = vpop.f32.mrf.mxu3  ;;  %v568_v20 = vadd.f32 %v567_v29, %v446_v31 }
  0xd5   : > { %v585_v6 = vadd.f32 %v1223_v59, %v1215_v47 }
  0xd6   : > { %v572_v62 = vpop.f32.mrf.mxu1  ;;  %v773_v33 = vadd.f32 %v742_v57, %v568_v20 }
  0xd8   : > { %v810_v46 = vmul.f32 %v773_v33, %v773_v33  ;;  %v788_v52 = vadd.f32 %v787_v44, %v773_v33  ;;  %v841_v44 = vld [vmem:[%s1248_s2] sm:$0x3] }
  0xd9   : > { %v744_v60 = vpop.f32.mrf.mxu2 }
  0xda   : > { %v825_v54 = vadd.f32 %v824_v51, %v810_v46 }
  0xdb   : > { %v448_v15 = vpop.f32.mrf.mxu0 }
  0xdc   : > { %v1225_v61 = vpop.f32.mrf.mxu3  ;;  %v570_v16 = vadd.f32 %v569_v58, %v448_v15 }
  0xdd   : > { %v588_v12 = vadd.f32 %v1225_v61, %v1217_v50 }
  0xde   : > { %v574_v4 = vpop.f32.mrf.mxu1  ;;  %v774_v41 = vadd.f32 %v744_v60, %v570_v16 }
  0xe0   : > { %v811_v13 = vmul.f32 %v774_v41, %v774_v41  ;;  %v789_v55 = vadd.f32 %v788_v52, %v774_v41 }
  0xe1   : > { %v747_v26 = vpop.f32.mrf.mxu2 }
  0xe2   : > { %v826_v31 = vadd.f32 %v825_v54, %v811_v13 }
  0xe3   : > { %v451_v36 = vpop.f32.mrf.mxu0 }
  0xe4   : > { %v1227_v1 = vpop.f32.mrf.mxu3  ;;  %v573_v34 = vadd.f32 %v572_v62, %v451_v36 }
  0xe5   : > { %v590_v23 = vadd.f32 %v1227_v1, %v1219_v53 }
  0xe6   : > { %v577_v10 = vpop.f32.mrf.mxu1  ;;  %v775_v25 = vadd.f32 %v747_v26, %v573_v34 }
  0xe8   : > { %v812_v57 = vmul.f32 %v775_v25, %v775_v25  ;;  %v790_v15 = vadd.f32 %v789_v55, %v775_v25 }
  0xe9   : > { %v749_v9 = vpop.f32.mrf.mxu2 }
  0xea   : > { %v827_v26 = vadd.f32 %v826_v31, %v812_v57 }
  0xeb   : > { %v453_v18 = vpop.f32.mrf.mxu0 }
  0xec   : > { %v757_v21 = vpop.f32.mrf.mxu3  ;;  %v575_v42 = vadd.f32 %v574_v4, %v453_v18 }
  0xed   : > { %v779_v7 = vadd.f32 %v757_v21, %v583_v63 }
  0xee   : > { %v776_v29 = vadd.f32 %v749_v9, %v575_v42  ;;  %v579_v60 = vpop.f32.mrf.mxu1 }
  0xef   : > { %v816_v18 = vmul.f32 %v779_v7, %v779_v7 }
  0xf0   : > { %v813_v62 = vmul.f32 %v776_v29, %v776_v29  ;;  %v791_v2 = vadd.f32 %v790_v15, %v776_v29 }
  0xf1   : > { %v752_v37 = vpop.f32.mrf.mxu2 }
  0xf2   : > { %v828_v8 = vadd.f32 %v827_v26, %v813_v62 }
  0xf3   : > { %v456_v43 = vpop.f32.mrf.mxu0 }
  0xf4   : > { %v759_v48 = vpop.f32.mrf.mxu3  ;;  %v578_v49 = vadd.f32 %v577_v10, %v456_v43 }
  0xf5   : > { %v780_v14 = vadd.f32 %v759_v48, %v585_v6 }
  0xf6   : > { %v777_v58 = vadd.f32 %v752_v37, %v578_v49 }
  0xf7   : > { %v817_v24 = vmul.f32 %v780_v14, %v780_v14 }
  0xf8   : > { %v814_v3 = vmul.f32 %v777_v58, %v777_v58  ;;  %v792_v9 = vadd.f32 %v791_v2, %v777_v58 }
  0xf9   : > { %v754_v36 = vpop.f32.mrf.mxu2 }
  0xfa   : > { %v829_v17 = vadd.f32 %v828_v8, %v814_v3 }
  0xfb   : > { %v458_v0 = vpop.f32.mrf.mxu0 }
  0xfc   : > { %v762_v4 = vpop.f32.mrf.mxu3  ;;  %v580_v5 = vadd.f32 %v579_v60, %v458_v0 }
  0xfd   : > { %v781_v19 = vadd.f32 %v762_v4, %v588_v12 }
  0xfe   : > { %v778_v11 = vadd.f32 %v754_v36, %v580_v5 }
  0xff   : > { %v818_v16 = vmul.f32 %v781_v19, %v781_v19 }
 0x100   : > { %v793_v45 = vadd.f32 %v792_v9, %v778_v11  ;;  %v815_v56 = vmul.f32 %v778_v11, %v778_v11 }
 0x102   : > { %v794_v20 = vadd.f32 %v793_v45, %v779_v7  ;;  %v830_v22 = vadd.f32 %v829_v17, %v815_v56 }
 0x104   : > { %v831_v47 = vadd.f32 %v830_v22, %v816_v18  ;;  %v764_v59 = vpop.f32.mrf.mxu3  ;;  %v795_v21 = vadd.f32 %v794_v20, %v780_v14 }
 0x105   : > { %v782_v27 = vadd.f32 %v764_v59, %v590_v23 }
 0x106   : > { %v796_v28 = vadd.f32 %v795_v21, %v781_v19  ;;  %v832_v30 = vadd.f32 %v831_v47, %v817_v24 }
 0x107   : > { %v819_v61 = vmul.f32 %v782_v27, %v782_v27 }
 0x108   : > { %v797_v50 = vadd.f32 %v796_v28, %v782_v27  ;;  %v833_v32 = vadd.f32 %v832_v30, %v818_v16 }
 0x10a   : > { %v798_v33 = vrot.slane %v797_v50, 4  ;;  %v834_v34 = vadd.f32 %v833_v32, %v819_v61 }
 0x10c   : > { %v799_v10 = vadd.f32 %v798_v33, %v797_v50  ;;  %v835_v35 = vrot.slane %v834_v34, 4 }
 0x10e   : > { %v800_v37 = vrot.slane %v799_v10, 2  ;;  %v836_v38 = vadd.f32 %v835_v35, %v834_v34 }
 0x110   : > { %v801_v40 = vadd.f32 %v800_v37, %v799_v10  ;;  %v837_v41 = vrot.slane %v836_v38, 2 }
 0x112   : > { %v802_v53 = vrot.slane %v801_v40, 1  ;;  %v838_v1 = vadd.f32 %v837_v41, %v836_v38 }
 0x114   : > { %v839_v42 = vrot.slane %v838_v1, 1  ;;  %v803_v39 = vadd.f32 %v802_v53, %v801_v40 }
 0x116   : > { %v840_v43 = vadd.f32 %v839_v42, %v838_v1 }
 0x118   : > { %v843_v46 = vsel %vm842_vm8, %v803_v39, %v840_v43 }
 0x119   : > { %v844_v25 = vadd.f32 %v843_v46, %v841_v44 }
 0x11b   : > { %845 = vst [vmem:[%s1248_s2] sm:$0x3] %v844_v25 }
 0x11c PF: > { %s12_s9 = sadd.s32 1, %s993_s9  }
 0x11d   : > { %p9_p5 = scmp.ge.s32.totalorder %s12_s9, 6  }
 0x11f   :  { %11 = sbr.rel (!%p9_p5) target bundleno = 1 (0x1), region = 60 }

// kernel: conv_block.3
= control target key start
LH: loop header
LB: loop body
LE: loop exit
PB: predicated region body
PF: predicated region fallthrough
CT: control target
= control target key end

     0   :  { %s1125_s15 = smov 0   ;;  %s1410_s0 = inlined_call_operand.vmem [shape: bf16[32,18,12], index: 0, kind: input, shape index: {}]   ;;  %s1411_s1 = inlined_call_operand.vmem [shape: bf16[3,12,128], index: 1, kind: input, shape index: {}]   ;;  %s1412_s2 = inlined_call_operand.vmem [shape: f32[1,128], index: 2, kind: input, shape index: {}]   ;;  %s1413_s3 = inlined_call_operand.vmem [shape: f32[1,128], index: 3, kind: input, shape index: {}]   ;;  %s1414_s4 = inlined_call_operand.vmem [shape: f32[512,128], index: 4, kind: output, shape index: {}]  }
   0x1 LB: > { %s976_s16 = sadd.s32 4294967295, %s1098_s15   ;;  %p980_p0 = scmp.ge.s32.totalorder %s1098_s15, 1  ;;  %s1098_s15 = sphi %s1125_s15, %s14_s15  }
   0x2   : > { %p164_p1 = scmp.lt.s32.totalorder %s1098_s15, 5 }
   0x4   : > { %p165_p2 = pnand %p980_p0, %p164_p1 }
   0x5   : > { %s981_s21 = sshll.u32 (!%p165_p2), %s976_s16, 3  ;;  %s983_s8 = sshll.u32 (!%p165_p2), %s976_s16, 4 }
   0x6   : > { %168 = sbr.rel (%p165_p2) target bundleno = 264 (0x108), region = 36  ;;  %p192_p3 = scmp.lt.s32.totalorder (!%p165_p2), %s981_s21, 31 }
   0x7   : > { %p199_p4 = scmp.lt.s32.totalorder (!%p165_p2), %s983_s8, 63 }
   0xb   : > { %v1033_v0 = vld [vmem:[%s1411_s1] sm:$0xf]  ;;  %v1075_v1 = vld [vmem:[%s1411_s1] sm:$0x30]  ;;  %vm483_vm0 = vcmask 1045504   ;;  %s1420_s21 = smov (!%p192_p3, %s981_s21), 31 }
   0xc   : > { %v1034_v2 = vor.u32 %v1075_v1, %v1033_v0  ;;  %v1055_v3 = vld [vmem:[%s1411_s1 + $0x10] sm:$0xf]  ;;  %v1077_v4 = vld [vmem:[%s1411_s1 + $0x10] sm:$0x30]  ;;  %v989_v6 = vld [vmem:[%s1411_s1 + $0x8] sm:$0xf] }
   0xd   : > { %v1056_v5 = vor.u32 %v1077_v4, %v1055_v3  ;;  %v1076_v7 = vld [vmem:[%s1411_s1 + $0x8] sm:$0x30]  ;;  %vm665_vm1 = vcmask 1042432   ;;  %vm666_vm2 = vcmask 1046532   ;;  %s1081_s30 = smul.u32 12, %s1420_s21  ;;  %vm458_vm3 = vcmask 97280  }
   0xe   : > { %v606_v8 = vsel %vm483_vm0, %v1034_v2, 0  ;;  %v990_v9 = vor.u32 %v1076_v7, %v989_v6  ;;  %vm1164_vm4 = vmor %vm665_vm1, %vm666_vm2  ;;  %vm231_vm5 = vsmask.f32 3328  ;;  %vm232_vm6 = vsmask.f32 7440  ;;  %s1422_s8 = smov (!%p199_p4, %s983_s8), 63 }
   0xf   : > { %615 = vmatpush.bf16.msra.mxu1 %v606_v8  ;;  %v1155_v10 = vsel %vm483_vm0, %v1056_v5, 0  ;;  %s1162_s7 = scalar_lea.vmem %s1410_s0, %s1081_s30  ;;  %vm1190_vm7 = vmor %vm231_vm5, %vm232_vm6  ;;  %s984_s13 = sshll.u32 %s1422_s8, 3 }
  0x10   : > { %790 = vmatpush.bf16.msra.mxu2 %v1155_v10  ;;  %v485_v11 = vsel %vm483_vm0, %v990_v9, 0  ;;  %v1067_v13 = vld [vmem:[%s1162_s7] sm:$0xff]  ;;  %v207_v16 = vld [vmem:[%s1162_s7 + $0x8] sm:$0x1]  ;;  %v1179_v30 = vld [vmem:[%s1162_s7 + $0x4c] sm:$0xf]  ;;  %s1347_s17 = scalar_lea.vmem %s1414_s4, %s984_s13 }
  0x11   : > { %494 = vmatpush.bf16.msra.mxu0 %v485_v11  ;;  %1078 = vmatpush.bf16.msra.mxu3 %v485_v11  ;;  %v205_v14 = vld [vmem:[%s1162_s7] sm:$0xf]  ;;  %v206_v15 = vld [vmem:[%s1162_s7 + $0x4] sm:$0xf]  ;;  %v673_v21 = vrot.slane %v207_v16, 5  ;;  %v254_v24 = vshll.u32 %v207_v16, 16 }
  0x12   : > { %v1043_v17 = vrot.slane %v205_v14, 9  ;;  %v670_v18 = vrot.slane %v206_v15, 5  ;;  %v235_v19 = vshrl.u32 %v205_v14, 16  ;;  %v238_v20 = vshll.u32 %v205_v14, 16  ;;  %1035 = vmatmul.msk.bf16.vlgmr.msra.gmra.mxu1 %vm458_vm3, %v1067_v13  ;;  %v1174_v25 = vld [vmem:[%s1162_s7 + $0x48] sm:$0xf] }
  0x13   : > { %v244_v22 = vshll.u32 %v206_v15, 16  ;;  %v248_v23 = vshrl.u32 %v206_v15, 16  ;;  %v256_v34 = vrot.slane %v254_v24, 5  ;;  %v1182_v35 = vld [vmem:[%s1162_s7 + $0x50] sm:$0x1]  ;;  %v379_v38 = vshrl.u32 %v1174_v25, 16 }
  0x14   : > { %v671_v26 = vsel %vm1164_vm4, %v1043_v17, %v670_v18  ;;  %v672_v27 = vrot.slane %v670_v18, 4  ;;  %v237_v28 = vrot.slane %v235_v19, 4  ;;  %v240_v29 = vrot.slane %v238_v20, 5  ;;  %v209_v55 = vld [vmem:[%s1162_s7 + $0x10] sm:$0xf] }
  0x15   : > { %1079 = vmatpush.bf16.msrb.mxu3 %v606_v8  ;;  %v727_v31 = vunpack.c.l.b16 %v671_v26  ;;  %v246_v32 = vrot.slane %v244_v22, 5  ;;  %v250_v33 = vrot.slane %v248_v23, 4  ;;  %v382_v39 = vshll.u32 %v1174_v25, 16  ;;  %v210_v56 = vld [vmem:[%s1162_s7 + $0x14] sm:$0x1]  ;;  %v1068_v11 = vld [vmem:[%s1162_s7 + $0xc] sm:$0xff] }
  0x16   : > { %v674_v36 = vsel %vm1164_vm4, %v672_v27, %v673_v21  ;;  %v241_v37 = vor.u32 %v240_v29, %v237_v28  ;;  %v388_v43 = vshll.u32 %v1179_v30, 16  ;;  %v392_v44 = vshrl.u32 %v1179_v30, 16  ;;  %v208_v61 = vld [vmem:[%s1162_s7 + $0xc] sm:$0xf]  ;;  %v1213_v15 = vld [vmem:[%s1162_s7 + $0x54] sm:$0xf] }
  0x17   : > { %v728_v40 = vunpack.c.l.b16 %v674_v36  ;;  %v251_v42 = vor.u32 %v250_v33, %v246_v32  ;;  %v381_v46 = vrot.slane %v379_v38, 4  ;;  %v384_v47 = vrot.slane %v382_v39, 5  ;;  %v1219_v24 = vld [vmem:[%s1162_s7 + $0x58] sm:$0xf]  ;;  %v1222_v29 = vld [vmem:[%s1162_s7 + $0x5c] sm:$0x1] }
  0x18   : > { %v242_v45 = vrot.slane %v241_v37, 4  ;;  %v398_v48 = vshll.u32 %v1182_v35, 16  ;;  %v390_v51 = vrot.slane %v388_v43, 5  ;;  %v394_v52 = vrot.slane %v392_v44, 4  ;;  %v212_v36 = vld [vmem:[%s1162_s7 + $0x1c] sm:$0xf] }
  0x19   : > { %v743_v49 = vpack.c.b16 %v728_v40, %v727_v31  ;;  %v252_v50 = vrot.slane %v251_v42, 4  ;;  %v385_v54 = vor.u32 %v384_v47, %v381_v46  ;;  %v1044_v0 = vrot.slane %v208_v61, 9 }
  0x1a   : > { %v247_v53 = vsel %vm1190_vm7, %v242_v45, %v246_v32  ;;  %v395_v59 = vor.u32 %v394_v52, %v390_v51  ;;  %v400_v60 = vrot.slane %v398_v48, 5  ;;  %v677_v2 = vrot.slane %v209_v55, 5 }
  0x1b   : > { %1057 = vmatmul.msk.bf16.vlgmr.msra.gmra.mxu2 %vm458_vm3, %v743_v49  ;;  %v257_v57 = vsel %vm1190_vm7, %v252_v50, %v256_v34  ;;  %v429_v58 = vunpack.c.l.b16 %v247_v53  ;;  %v386_v63 = vrot.slane %v385_v54, 4  ;;  %v680_v3 = vrot.slane %v210_v56, 5  ;;  %v211_v49 = vld [vmem:[%s1162_s7 + $0x18] sm:$0xf]  ;;  %v213_v50 = vld [vmem:[%s1162_s7 + $0x20] sm:$0x1] }
  0x1c   : > { %v430_v62 = vunpack.c.l.b16 %v257_v57  ;;  %v396_v1 = vrot.slane %v395_v59, 4  ;;  %v259_v6 = vshrl.u32 %v208_v61, 16  ;;  %v262_v7 = vshll.u32 %v208_v61, 16 }
  0x1d   : > { %v391_v5 = vsel %vm1190_vm7, %v386_v63, %v390_v51  ;;  %v678_v13 = vsel %vm1164_vm4, %v1044_v0, %v677_v2  ;;  %v679_v14 = vrot.slane %v677_v2, 4  ;;  %v268_v21 = vshll.u32 %v209_v55, 16 }
  0x1e   : > { %v445_v4 = vpack.c.b16 %v430_v62, %v429_v58  ;;  %v401_v8 = vsel %vm1190_vm7, %v396_v1, %v400_v60  ;;  %v441_v9 = vunpack.c.l.b16 %v391_v5  ;;  %v729_v17 = vunpack.c.l.b16 %v678_v13 }
  0x1f   : > { %v442_v16 = vunpack.c.l.b16 %v401_v8  ;;  %v261_v18 = vrot.slane %v259_v6, 4  ;;  %v264_v19 = vrot.slane %v262_v7, 5  ;;  %v681_v20 = vsel %vm1164_vm4, %v679_v14, %v680_v3 }
  0x20   : > { %991 = vmatmul.msk.bf16.vlgmr.msra.gmra.mxu0 %vm458_vm3, %v445_v4  ;;  %v272_v22 = vshrl.u32 %v209_v55, 16  ;;  %v278_v23 = vshll.u32 %v210_v56, 16  ;;  %v730_v27 = vunpack.c.l.b16 %v681_v20  ;;  %v403_v31 = vshrl.u32 %v1213_v15, 16 }
  0x21   : > { %v451_v26 = vpack.c.b16 %v442_v16, %v441_v9  ;;  %v265_v28 = vor.u32 %v264_v19, %v261_v18  ;;  %v270_v32 = vrot.slane %v268_v21, 5  ;;  %v406_v34 = vshll.u32 %v1213_v15, 16  ;;  %v1069_v19 = vld [vmem:[%s1162_s7 + $0x18] sm:$0xff]  ;;  %v214_v21 = vld [vmem:[%s1162_s7 + $0x24] sm:$0xf] }
  0x22   : > { %1036 = vmatmul.msk.bf16.gmra.mxu1 %vm458_vm3, %v1068_v11  ;;  %v274_v33 = vrot.slane %v272_v22, 4  ;;  %v280_v38 = vrot.slane %v278_v23, 5  ;;  %v405_v39 = vrot.slane %v403_v31, 4  ;;  %v412_v40 = vshll.u32 %v1219_v24, 16 }
  0x23   : > { %997 = vmatmul.msk.bf16.vlgmr.msra.gmra.mxu3 %vm458_vm3, %v451_v26  ;;  %v266_v37 = vrot.slane %v265_v28, 4  ;;  %v408_v43 = vrot.slane %v406_v34, 5  ;;  %v416_v44 = vshrl.u32 %v1219_v24, 16  ;;  %v422_v45 = vshll.u32 %v1222_v29, 16  ;;  %v215_v28 = vld [vmem:[%s1162_s7 + $0x28] sm:$0xf] }
  0x24   : > { %v275_v42 = vor.u32 %v274_v33, %v270_v32  ;;  %1080 = vmatpush.bf16.msra.mxu3 %v1155_v10  ;;  %v744_v46 = vpack.c.b16 %v730_v27, %v729_v17  ;;  %v414_v48 = vrot.slane %v412_v40, 5  ;;  %v684_v51 = vrot.slane %v212_v36, 5 }
  0x25   : > { %v271_v47 = vsel %vm1190_vm7, %v266_v37, %v270_v32  ;;  %v409_v53 = vor.u32 %v408_v43, %v405_v39  ;;  %v418_v54 = vrot.slane %v416_v44, 4  ;;  %v1045_v55 = vrot.slane %v211_v49, 9  ;;  %v216_v39 = vld [vmem:[%s1162_s7 + $0x2c] sm:$0x1] }
  0x26   : > { %v276_v52 = vrot.slane %v275_v42, 4  ;;  %v431_v56 = vunpack.c.l.b16 %v271_v47  ;;  %v424_v57 = vrot.slane %v422_v45, 5  ;;  %v686_v58 = vrot.slane %v684_v51, 4 }
  0x27   : > { %v410_v60 = vrot.slane %v409_v53, 4  ;;  %v419_v10 = vor.u32 %v418_v54, %v414_v48  ;;  %v687_v61 = vrot.slane %v213_v50, 5  ;;  %v283_v63 = vshrl.u32 %v211_v49, 16 }
  0x28   : > { %v281_v59 = vsel %vm1190_vm7, %v276_v52, %v280_v38  ;;  %v286_v0 = vshll.u32 %v211_v49, 16  ;;  %v685_v3 = vsel %vm1164_vm4, %v1045_v55, %v684_v51  ;;  %v292_v4 = vshll.u32 %v212_v36, 16  ;;  %v218_v49 = vld [vmem:[%s1162_s7 + $0x34] sm:$0xf] }
  0x29   : > { %v432_v62 = vunpack.c.l.b16 %v281_v59  ;;  %v415_v1 = vsel %vm1190_vm7, %v410_v60, %v414_v48  ;;  %v420_v2 = vrot.slane %v419_v10, 4  ;;  %v285_v7 = vrot.slane %v283_v63, 4 }
  0x2a   : > { %v443_v6 = vunpack.c.l.b16 %v415_v1  ;;  %v288_v8 = vrot.slane %v286_v0, 5  ;;  %v688_v11 = vsel %vm1164_vm4, %v686_v58, %v687_v61  ;;  %v294_v13 = vrot.slane %v292_v4, 5 }
  0x2b   : > { %1058 = vmatmul.msk.bf16.gmra.mxu2 %vm458_vm3, %v744_v46  ;;  %v446_v5 = vpack.c.b16 %v432_v62, %v431_v56  ;;  %v425_v9 = vsel %vm1190_vm7, %v420_v2, %v424_v57  ;;  %v296_v14 = vshrl.u32 %v212_v36, 16  ;;  %v302_v18 = vshll.u32 %v213_v50, 16  ;;  %v217_v46 = vld [vmem:[%s1162_s7 + $0x30] sm:$0xf]  ;;  %v219_v50 = vld [vmem:[%s1162_s7 + $0x38] sm:$0x1] }
  0x2c   : > { %v444_v16 = vunpack.c.l.b16 %v425_v9  ;;  %v289_v17 = vor.u32 %v288_v8, %v285_v7  ;;  %v712_v22 = vrot.slane %v1179_v30, 5  ;;  %v731_v26 = vunpack.c.l.b16 %v685_v3 }
  0x2d   : > { %v298_v20 = vrot.slane %v296_v14, 4  ;;  %v732_v27 = vunpack.c.l.b16 %v688_v11  ;;  %v304_v33 = vrot.slane %v302_v18, 5  ;;  %v307_v34 = vshrl.u32 %v214_v21, 16 }
  0x2e   : > { %v452_v23 = vpack.c.b16 %v444_v16, %v443_v6  ;;  %v290_v31 = vrot.slane %v289_v17, 4  ;;  %v310_v36 = vshll.u32 %v214_v21, 16  ;;  %v1049_v37 = vrot.slane %v1174_v25, 9 }
  0x2f   : > { %v299_v32 = vor.u32 %v298_v20, %v294_v13  ;;  %v691_v40 = vrot.slane %v215_v28, 5  ;;  %v714_v42 = vrot.slane %v712_v22, 4  ;;  %v715_v43 = vrot.slane %v1182_v35, 5 }
  0x30   : > { %992 = vmatmul.msk.bf16.gmra.mxu0 %vm458_vm3, %v446_v5  ;;  %v745_v44 = vpack.c.b16 %v732_v27, %v731_v26  ;;  %v316_v45 = vshll.u32 %v215_v28, 16  ;;  %v295_v47 = vsel %vm1190_vm7, %v290_v31, %v294_v13  ;;  %v320_v48 = vshrl.u32 %v215_v28, 16  ;;  %v1070_v27 = vld [vmem:[%s1162_s7 + $0x24] sm:$0xff] }
  0x31   : > { %v300_v38 = vrot.slane %v299_v32, 4  ;;  %v1047_v51 = vrot.slane %v217_v46, 9  ;;  %v1046_v52 = vrot.slane %v214_v21, 9  ;;  %v694_v53 = vrot.slane %v216_v39, 5 }
  0x32   : > { %1037 = vmatmul.msk.bf16.gmra.mxu1 %vm458_vm3, %v1069_v19  ;;  %v309_v54 = vrot.slane %v307_v34, 4  ;;  %v312_v55 = vrot.slane %v310_v36, 5  ;;  %v693_v35 = vrot.slane %v691_v40, 4  ;;  %v698_v56 = vrot.slane %v218_v49, 5  ;;  %v1073_v34 = vld [vmem:[%s1162_s7 + $0x48] sm:$0xff] }
  0x33   : > { %998 = vmatmul.msk.bf16.gmra.mxu3 %vm458_vm3, %v452_v23  ;;  %v305_v25 = vsel %vm1190_vm7, %v300_v38, %v304_v33  ;;  %v701_v57 = vrot.slane %v219_v50, 5  ;;  %v331_v58 = vshrl.u32 %v217_v46, 16  ;;  %v433_v59 = vunpack.c.l.b16 %v295_v47 }
  0x34   : > { %v434_v60 = vunpack.c.l.b16 %v305_v25  ;;  %v334_v10 = vshll.u32 %v217_v46, 16  ;;  %v340_v61 = vshll.u32 %v218_v49, 16  ;;  %v318_v62 = vrot.slane %v316_v45, 5  ;;  %v220_v25 = vld [vmem:[%s1162_s7 + $0x3c] sm:$0xf] }
  0x35   : > { %v322_v63 = vrot.slane %v320_v48, 4  ;;  %v699_v0 = vsel %vm1164_vm4, %v1047_v51, %v698_v56  ;;  %v700_v1 = vrot.slane %v698_v56, 4  ;;  %v313_v2 = vor.u32 %v312_v55, %v309_v54  ;;  %v221_v48 = vld [vmem:[%s1162_s7 + $0x40] sm:$0xf] }
  0x36   : > { %v735_v3 = vunpack.c.l.b16 %v699_v0  ;;  %v333_v4 = vrot.slane %v331_v58, 4  ;;  %v336_v5 = vrot.slane %v334_v10, 5  ;;  %v342_v7 = vrot.slane %v340_v61, 5 }
  0x37   : > { %v702_v6 = vsel %vm1164_vm4, %v700_v1, %v701_v57  ;;  %v344_v8 = vshrl.u32 %v218_v49, 16  ;;  %v350_v9 = vshll.u32 %v219_v50, 16  ;;  %v447_v11 = vpack.c.b16 %v434_v60, %v433_v59  ;;  %v222_v50 = vld [vmem:[%s1162_s7 + $0x44] sm:$0x1] }
  0x38   : > { %v736_v13 = vunpack.c.l.b16 %v702_v6  ;;  %v337_v14 = vor.u32 %v336_v5, %v333_v4  ;;  %v692_v16 = vsel %vm1164_vm4, %v1046_v52, %v691_v40  ;;  %v323_v17 = vor.u32 %v322_v63, %v318_v62 }
  0x39   : > { %v326_v18 = vshll.u32 %v216_v39, 16  ;;  %v346_v19 = vrot.slane %v344_v8, 4  ;;  %v695_v20 = vsel %vm1164_vm4, %v693_v35, %v694_v53  ;;  %v314_v21 = vrot.slane %v313_v2, 4 }
  0x3a   : > { %v1276_v23 = vpack.c.b16 %v736_v13, %v735_v3  ;;  %v338_v26 = vrot.slane %v337_v14, 4  ;;  %v352_v31 = vrot.slane %v350_v9, 5  ;;  %v713_v32 = vsel %vm1164_vm4, %v1049_v37, %v712_v22 }
  0x3b   : > { %1059 = vmatmul.msk.bf16.gmra.mxu2 %vm458_vm3, %v745_v44  ;;  %v347_v28 = vor.u32 %v346_v19, %v342_v7  ;;  %v716_v33 = vsel %vm1164_vm4, %v714_v42, %v715_v43  ;;  %v739_v38 = vunpack.c.l.b16 %v713_v32  ;;  %v324_v40 = vrot.slane %v323_v17, 4 }
  0x3c   : > { %v343_v36 = vsel %vm1190_vm7, %v338_v26, %v342_v7  ;;  %v740_v39 = vunpack.c.l.b16 %v716_v33  ;;  %v328_v44 = vrot.slane %v326_v18, 5  ;;  %v733_v45 = vunpack.c.l.b16 %v692_v16 }
  0x3d   : > { %v348_v30 = vrot.slane %v347_v28, 4  ;;  %v734_v46 = vunpack.c.l.b16 %v695_v20  ;;  %v437_v22 = vunpack.c.l.b16 %v343_v36  ;;  %v319_v42 = vsel %vm1190_vm7, %v314_v21, %v318_v62  ;;  %v1071_v20 = vld [vmem:[%s1162_s7 + $0x30] sm:$0xff]  ;;  %v1072_v36 = vld [vmem:[%s1162_s7 + $0x3c] sm:$0xff] }
  0x3e   : > { %v749_v37 = vpack.c.b16 %v740_v39, %v739_v38  ;;  %v329_v49 = vsel %vm1190_vm7, %v324_v40, %v328_v44  ;;  %v1048_v51 = vrot.slane %v220_v25, 9  ;;  %v705_v52 = vrot.slane %v221_v48, 5  ;;  %v1335_v40 = vld [vmem:[%s1412_s2] ss:$0 sm:$0xff] }
  0x3f   : > { %v353_v43 = vsel %vm1190_vm7, %v348_v30, %v352_v31  ;;  %v746_v53 = vpack.c.b16 %v734_v46, %v733_v45  ;;  %v435_v54 = vunpack.c.l.b16 %v319_v42  ;;  %v708_v35 = vrot.slane %v222_v50, 5  ;;  %v1340_v30 = vld [vmem:[%s1413_s3] ss:$0 sm:$0xff] }
  0x40   : > { %993 = vmatmul.msk.bf16.gmra.mxu0 %vm458_vm3, %v447_v11  ;;  %v438_v47 = vunpack.c.l.b16 %v353_v43  ;;  %v706_v56 = vsel %vm1164_vm4, %v1048_v51, %v705_v52  ;;  %v707_v57 = vrot.slane %v705_v52, 4  ;;  %v355_v58 = vshrl.u32 %v220_v25, 16 }
  0x41   : > { %v358_v59 = vshll.u32 %v220_v25, 16  ;;  %v436_v60 = vunpack.c.l.b16 %v329_v49  ;;  %v737_v10 = vunpack.c.l.b16 %v706_v56  ;;  %v364_v61 = vshll.u32 %v221_v48, 16 }
  0x42   : > { %1038 = vmatmul.msk.bf16.gmra.mxu1 %vm458_vm3, %v1070_v27  ;;  %v449_v55 = vpack.c.b16 %v438_v47, %v437_v22  ;;  %v368_v62 = vshrl.u32 %v221_v48, 16  ;;  %v709_v63 = vsel %vm1164_vm4, %v707_v57, %v708_v35  ;;  %v357_v0 = vrot.slane %v355_v58, 4 }
  0x43   : > { %1041 = vmatmul.msk.bf16.vlgmr.msrb.gmra.mxu3 %vm458_vm3, %v1073_v34  ;;  %v360_v1 = vrot.slane %v358_v59, 5  ;;  %v738_v2 = vunpack.c.l.b16 %v709_v63  ;;  %v366_v3 = vrot.slane %v364_v61, 5  ;;  %v374_v6 = vshll.u32 %v222_v50, 16 }
  0x44   : > { %v370_v4 = vrot.slane %v368_v62, 4  ;;  %v719_v7 = vrot.slane %v1219_v24, 5  ;;  %v448_v8 = vpack.c.b16 %v436_v60, %v435_v54  ;;  %v1050_v16 = vrot.slane %v1213_v15, 9  ;;  %v1074_v24 = vld [vmem:[%s1162_s7 + $0x54] sm:$0xff] }
  0x45   : > { %v361_v5 = vor.u32 %v360_v1, %v357_v0  ;;  %v748_v9 = vpack.c.b16 %v738_v2, %v737_v10  ;;  %v376_v14 = vrot.slane %v374_v6, 5  ;;  %v722_v19 = vrot.slane %v1222_v29, 5 }
  0x46   : > { %v371_v11 = vor.u32 %v370_v4, %v366_v3  ;;  %v721_v17 = vrot.slane %v719_v7, 4  ;;  %v720_v26 = vsel %vm1164_vm4, %v1050_v16, %v719_v7 }
  0x47   : > { %v362_v13 = vrot.slane %v361_v5, 4  ;;  %v741_v31 = vunpack.c.l.b16 %v720_v26 }
  0x48   : > { %v372_v18 = vrot.slane %v371_v11, 4  ;;  %v723_v15 = vsel %vm1164_vm4, %v721_v17, %v722_v19 }
  0x49   : > { %v367_v21 = vsel %vm1190_vm7, %v362_v13, %v366_v3  ;;  %v742_v32 = vunpack.c.l.b16 %v723_v15 }
  0x4a   : > { %v377_v27 = vsel %vm1190_vm7, %v372_v18, %v376_v14  ;;  %v439_v28 = vunpack.c.l.b16 %v367_v21 }
  0x4b   : > { %1060 = vmatmul.msk.bf16.gmra.mxu2 %vm458_vm3, %v746_v53  ;;  %v440_v29 = vunpack.c.l.b16 %v377_v27  ;;  %v750_v34 = vpack.c.b16 %v742_v32, %v741_v31 }
  0x4d   : > { %v450_v33 = vpack.c.b16 %v440_v29, %v439_v28 }
  0x50   : > { %994 = vmatmul.msk.bf16.gmra.mxu0 %vm458_vm3, %v448_v8 }
  0x52   : > { %1039 = vmatmul.msk.bf16.gmra.mxu1 %vm458_vm3, %v1071_v20 }
  0x53   : > { %1042 = vmatmul.msk.bf16.gmra.mxu3 %vm458_vm3, %v1074_v24 }
  0x5b   : > { %1061 = vmatmul.msk.bf16.gmra.mxu2 %vm458_vm3, %v1276_v23 }
  0x60   : > { %995 = vmatmul.msk.bf16.gmra.mxu0 %vm458_vm3, %v449_v55 }
  0x62   : > { %1040 = vmatmul.msk.bf16.gmra.mxu1 %vm458_vm3, %v1072_v36 }
  0x63   : > { %1063 = vmatmul.msk.bf16.vlgmr.msra.gmra.mxu3 %vm458_vm3, %v749_v37 }
  0x6b   : > { %1062 = vmatmul.msk.bf16.gmra.mxu2 %vm458_vm3, %v748_v9 }
  0x70   : > { %996 = vmatmul.msk.bf16.gmra.mxu0 %vm458_vm3, %v450_v33 }
  0x73   : > { %1064 = vmatmul.msk.bf16.gmra.mxu3 %vm458_vm3, %v750_v34 }
  0x8f   : > { %v617_v12 = vpop.f32.mrf.mxu1 }
  0x97   : > { %v619_v41 = vpop.f32.mrf.mxu1 }
  0x9d   : > { %v496_v38 = vpop.f32.mrf.mxu0 }
  0x9e   : > { %v618_v23 = vadd.f32 %v617_v12, %v496_v38  ;;  %v792_v39 = vpop.f32.mrf.mxu2 }
  0x9f   : > { %v622_v45 = vpop.f32.mrf.mxu1 }
  0xa0   : > { %v832_v44 = vadd.f32 %v792_v39, %v618_v23 }
  0xa2   : > { %v852_v46 = vmul.f32 %v1335_v40, %v832_v44 }
  0xa4   : > { %v872_v22 = vadd.f32 %v1340_v30, %v852_v46 }
  0xa5   : > { %v498_v37 = vpop.f32.mrf.mxu0 }
  0xa6   : > { %v888_v42 = vmax.f32 %v872_v22, 0.0  ;;  %v620_v43 = vadd.f32 %v619_v41, %v498_v37  ;;  %v794_v47 = vpop.f32.mrf.mxu2  ;;  %v1349_v25 = vpop.f32.mrf.mxu3 }
  0xa7   : > { %v624_v49 = vpop.f32.mrf.mxu1 }
  0xa8   : > { %904 = vst [vmem:[%s1347_s17] sm:$0xff] %v888_v42  ;;  %v833_v48 = vadd.f32 %v794_v47, %v620_v43 }
  0xaa   : > { %v853_v50 = vmul.f32 %v1335_v40, %v833_v48 }
  0xac   : > { %v873_v51 = vadd.f32 %v1340_v30, %v853_v50 }
  0xad   : > { %v501_v52 = vpop.f32.mrf.mxu0 }
  0xae   : > { %v889_v53 = vmax.f32 %v873_v51, 0.0  ;;  %v623_v54 = vadd.f32 %v622_v45, %v501_v52  ;;  %v797_v55 = vpop.f32.mrf.mxu2  ;;  %v1354_v35 = vpop.f32.mrf.mxu3 }
  0xaf   : > { %v627_v57 = vpop.f32.mrf.mxu1 }
  0xb0   : > { %905 = vst [vmem:[%s1347_s17 + $0x8] sm:$0xff] %v889_v53  ;;  %v834_v56 = vadd.f32 %v797_v55, %v623_v54 }
  0xb2   : > { %v854_v58 = vmul.f32 %v1335_v40, %v834_v56 }
  0xb4   : > { %v874_v59 = vadd.f32 %v1340_v30, %v854_v58 }
  0xb5   : > { %v503_v60 = vpop.f32.mrf.mxu0 }
  0xb6   : > { %v890_v10 = vmax.f32 %v874_v59, 0.0  ;;  %v625_v61 = vadd.f32 %v624_v49, %v503_v60  ;;  %v799_v62 = vpop.f32.mrf.mxu2  ;;  %v1359_v63 = vpop.f32.mrf.mxu3 }
  0xb7   : > { %v629_v1 = vpop.f32.mrf.mxu1 }
  0xb8   : > { %906 = vst [vmem:[%s1347_s17 + $0x10] sm:$0xff] %v890_v10  ;;  %v835_v0 = vadd.f32 %v799_v62, %v625_v61 }
  0xba   : > { %v855_v2 = vmul.f32 %v1335_v40, %v835_v0 }
  0xbc   : > { %v875_v3 = vadd.f32 %v1340_v30, %v855_v2 }
  0xbd   : > { %v506_v4 = vpop.f32.mrf.mxu0 }
  0xbe   : > { %v891_v5 = vmax.f32 %v875_v3, 0.0  ;;  %v628_v6 = vadd.f32 %v627_v57, %v506_v4  ;;  %v802_v7 = vpop.f32.mrf.mxu2  ;;  %v1364_v8 = vpop.f32.mrf.mxu3 }
  0xbf   : > { %v632_v13 = vpop.f32.mrf.mxu1 }
  0xc0   : > { %907 = vst [vmem:[%s1347_s17 + $0x18] sm:$0xff] %v891_v5  ;;  %v836_v9 = vadd.f32 %v802_v7, %v628_v6 }
  0xc2   : > { %v856_v11 = vmul.f32 %v1335_v40, %v836_v9 }
  0xc4   : > { %v876_v14 = vadd.f32 %v1340_v30, %v856_v11 }
  0xc5   : > { %v508_v16 = vpop.f32.mrf.mxu0 }
  0xc6   : > { %v892_v17 = vmax.f32 %v876_v14, 0.0  ;;  %v630_v18 = vadd.f32 %v629_v1, %v508_v16  ;;  %v804_v19 = vpop.f32.mrf.mxu2  ;;  %v647_v20 = vpop.f32.mrf.mxu3 }
  0xc7   : > { %v634_v28 = vpop.f32.mrf.mxu1  ;;  %v648_v54 = vadd.f32 %v647_v20, %v1349_v25 }
  0xc8   : > { %908 = vst [vmem:[%s1347_s17 + $0x20] sm:$0xff] %v892_v17  ;;  %v837_v21 = vadd.f32 %v804_v19, %v630_v18 }
  0xca   : > { %v857_v26 = vmul.f32 %v1335_v40, %v837_v21 }
  0xcc   : > { %v877_v24 = vadd.f32 %v1340_v30, %v857_v26 }
  0xcd   : > { %v511_v27 = vpop.f32.mrf.mxu0 }
  0xce   : > { %v893_v15 = vmax.f32 %v877_v24, 0.0  ;;  %v633_v31 = vadd.f32 %v632_v13, %v511_v27  ;;  %v807_v29 = vpop.f32.mrf.mxu2  ;;  %v649_v32 = vpop.f32.mrf.mxu3 }
  0xcf   : > { %v637_v44 = vpop.f32.mrf.mxu1  ;;  %v650_v25 = vadd.f32 %v649_v32, %v1354_v35 }
  0xd0   : > { %909 = vst [vmem:[%s1347_s17 + $0x28] sm:$0xff] %v893_v15  ;;  %v838_v33 = vadd.f32 %v807_v29, %v633_v31 }
  0xd2   : > { %v858_v34 = vmul.f32 %v1335_v40, %v838_v33 }
  0xd4   : > { %v878_v36 = vadd.f32 %v1340_v30, %v858_v34 }
  0xd5   : > { %v513_v12 = vpop.f32.mrf.mxu0 }
  0xd6   : > { %v894_v41 = vmax.f32 %v878_v36, 0.0  ;;  %v635_v38 = vadd.f32 %v634_v28, %v513_v12  ;;  %v809_v23 = vpop.f32.mrf.mxu2  ;;  %v652_v39 = vpop.f32.mrf.mxu3 }
  0xd7   : > { %v639_v50 = vpop.f32.mrf.mxu1  ;;  %v653_v19 = vadd.f32 %v652_v39, %v1359_v63 }
  0xd8   : > { %910 = vst [vmem:[%s1347_s17 + $0x30] sm:$0xff] %v894_v41  ;;  %v839_v45 = vadd.f32 %v809_v23, %v635_v38 }
  0xda   : > { %v859_v46 = vmul.f32 %v1335_v40, %v839_v45 }
  0xdc   : > { %v879_v22 = vadd.f32 %v1340_v30, %v859_v46 }
  0xdd   : > { %v516_v37 = vpop.f32.mrf.mxu0 }
  0xde   : > { %v895_v42 = vmax.f32 %v879_v22, 0.0  ;;  %v638_v43 = vadd.f32 %v637_v44, %v516_v37  ;;  %v812_v47 = vpop.f32.mrf.mxu2  ;;  %v654_v48 = vpop.f32.mrf.mxu3 }
  0xdf   : > { %v642_v62 = vpop.f32.mrf.mxu1  ;;  %v655_v33 = vadd.f32 %v654_v48, %v1364_v8 }
  0xe0   : > { %911 = vst [vmem:[%s1347_s17 + $0x38] sm:$0xff] %v895_v42  ;;  %v840_v49 = vadd.f32 %v812_v47, %v638_v43 }
  0xe2   : > { %v860_v51 = vmul.f32 %v1335_v40, %v840_v49 }
  0xe4   : > { %v880_v52 = vadd.f32 %v1340_v30, %v860_v51 }
  0xe5   : > { %v518_v53 = vpop.f32.mrf.mxu0 }
  0xe6   : > { %v896_v55 = vmax.f32 %v880_v52, 0.0  ;;  %v640_v56 = vadd.f32 %v639_v50, %v518_v53  ;;  %v814_v57 = vpop.f32.mrf.mxu2  ;;  %v822_v58 = vpop.f32.mrf.mxu3 }
  0xe7   : > { %v844_v59 = vadd.f32 %v822_v58, %v648_v54  ;;  %v644_v35 = vpop.f32.mrf.mxu1 }
  0xe8   : > { %912 = vst [vmem:[%s1347_s17 + $0x40] sm:$0xff] %v896_v55  ;;  %v841_v60 = vadd.f32 %v814_v57, %v640_v56 }
  0xe9   : > { %v864_v10 = vmul.f32 %v1335_v40, %v844_v59 }
  0xea   : > { %v861_v61 = vmul.f32 %v1335_v40, %v841_v60 }
  0xeb   : > { %v884_v0 = vadd.f32 %v1340_v30, %v864_v10 }
  0xec   : > { %v881_v1 = vadd.f32 %v1340_v30, %v861_v61 }
  0xed   : > { %v521_v2 = vpop.f32.mrf.mxu0  ;;  %v900_v3 = vmax.f32 %v884_v0, 0.0 }
  0xee   : > { %v897_v4 = vmax.f32 %v881_v1, 0.0  ;;  %v643_v5 = vadd.f32 %v642_v62, %v521_v2  ;;  %v817_v6 = vpop.f32.mrf.mxu2  ;;  %v824_v7 = vpop.f32.mrf.mxu3 }
  0xef   : > { %916 = vst [vmem:[%s1347_s17 + $0x60] sm:$0xff] %v900_v3  ;;  %v845_v9 = vadd.f32 %v824_v7, %v650_v25 }
  0xf0   : > { %v842_v11 = vadd.f32 %v817_v6, %v643_v5  ;;  %913 = vst [vmem:[%s1347_s17 + $0x48] sm:$0xff] %v897_v4 }
  0xf1   : > { %v865_v13 = vmul.f32 %v1335_v40, %v845_v9 }
  0xf2   : > { %v862_v14 = vmul.f32 %v1335_v40, %v842_v11 }
  0xf3   : > { %v885_v16 = vadd.f32 %v1340_v30, %v865_v13 }
  0xf4   : > { %v882_v17 = vadd.f32 %v1340_v30, %v862_v14 }
  0xf5   : > { %v523_v18 = vpop.f32.mrf.mxu0  ;;  %v901_v20 = vmax.f32 %v885_v16, 0.0 }
  0xf6   : > { %v898_v21 = vmax.f32 %v882_v17, 0.0  ;;  %v645_v26 = vadd.f32 %v644_v35, %v523_v18  ;;  %v819_v24 = vpop.f32.mrf.mxu2  ;;  %v827_v27 = vpop.f32.mrf.mxu3 }
  0xf7   : > { %917 = vst [vmem:[%s1347_s17 + $0x68] sm:$0xff] %v901_v20  ;;  %v846_v28 = vadd.f32 %v827_v27, %v653_v19 }
  0xf8   : > { %v843_v15 = vadd.f32 %v819_v24, %v645_v26  ;;  %914 = vst [vmem:[%s1347_s17 + $0x50] sm:$0xff] %v898_v21 }
  0xf9   : > { %v866_v31 = vmul.f32 %v1335_v40, %v846_v28 }
  0xfa   : > { %v863_v29 = vmul.f32 %v1335_v40, %v843_v15 }
  0xfb   : > { %v886_v32 = vadd.f32 %v1340_v30, %v866_v31 }
  0xfc   : > { %v883_v63 = vadd.f32 %v1340_v30, %v863_v29 }
  0xfd   : > { %v902_v34 = vmax.f32 %v886_v32, 0.0 }
  0xfe   : > { %v899_v36 = vmax.f32 %v883_v63, 0.0  ;;  %v829_v12 = vpop.f32.mrf.mxu3 }
  0xff   : > { %918 = vst [vmem:[%s1347_s17 + $0x70] sm:$0xff] %v902_v34  ;;  %v847_v41 = vadd.f32 %v829_v12, %v655_v33 }
 0x100   : > { %915 = vst [vmem:[%s1347_s17 + $0x58] sm:$0xff] %v899_v36 }
 0x101   : > { %v867_v38 = vmul.f32 %v1335_v40, %v847_v41 }
 0x103   : > { %v887_v23 = vadd.f32 %v1340_v30, %v867_v38 }
 0x105   : > { %v903_v39 = vmax.f32 %v887_v23, 0.0 }
 0x107   : > { %919 = vst [vmem:[%s1347_s17 + $0x78] sm:$0xff] %v903_v39 }
 0x108 PF: > { %s14_s15 = sadd.s32 1, %s1098_s15  }
 0x109   : > { %p11_p5 = scmp.ge.s32.totalorder %s14_s15, 6  }
 0x10b   :  { %13 = sbr.rel (!%p11_p5) target bundleno = 1 (0x1), region = 68 }

</bundles_post_ra>
